<compile_context>
chip_gen: v6e
topology: v6e:2x2x1
jax: 0.10.0
libtpu: 0.0.40
codegen_flags: <defaults>
</compile_context>

<pallas_src>
import functools
import numpy as np
import jax
import jax.numpy as jnp
from jax import lax
from jax.experimental import pallas as pl
from jax.experimental.pallas import tpu as pltpu


_LANE = 128


def _ceil_to(v, m):
    return ((v + m - 1) // m) * m


def _pad2(a, rows, cols):
    return jnp.pad(a, ((0, rows - a.shape[0]), (0, cols - a.shape[1])))


def _full_spec(shape):
    n = len(shape)
    return pl.BlockSpec(shape, lambda *_: (0,) * n)


def _vmem_limit_bytes():
    """Generation-aware VMEM cap: v5e/v6e have 128 MiB, v7x only 64 MiB per core.

    Resident blocks in these kernels are < 2 MiB, so a quarter of capacity (clamped to
    [8 MiB, 32 MiB]) leaves plenty of headroom for compiler scratch / double buffers.
    """
    try:
        cap = int(pltpu.get_tpu_info().vmem_capacity_bytes)
    except Exception:
        cap = 0
    if cap <= 0:
        cap = 64 * 1024 * 1024          # conservative fallback (v7x per-core physical VMEM)
    return int(max(8 * 1024 * 1024, min(cap // 4, 32 * 1024 * 1024)))


# ----------------------------------------------------------------------------
# Pallas kernels
# ----------------------------------------------------------------------------

def _fused_forward_kernel(a_ref, x_ref,
                          ew0_ref, eb0_ref, er0_ref,
                          ew1_ref, eb1_ref,
                          e2d_ref,
                          dw0_ref, db0_ref,
                          dw1_ref, db1_ref,
                          spa_ref, spb_ref, sna_ref, snb_ref,
                          cp_ref, cn_ref, loss_ref,
                          *, n_pos, n_neg):
    """Whole MGAE chain (both graphs, block-diagonal) + edge cosine + BCEWithLogits, fused."""
    A = a_ref[...]                                    # [M, M] block-diag masked adjacency (f32)
    X = x_ref[...]                                    # [M, Dp] f32 (x stacked for pos|neg graphs)
    m = A.shape[0]

    rows = lax.broadcasted_iota(jnp.int32, (m, m), 0)
    cols = lax.broadcasted_iota(jnp.int32, (m, m), 1)
    A_enc = jnp.where(rows == cols, 1.0, A)           # encoder graph = masked graph + self loops

    # Transpose each adjacency ONCE (XLU) so every aggregation is a plain MXU matmul and the
    # in-degrees are row sums of the transposed adjacency (XLU reduce; MXU stays free).
    A_enc_t = jnp.transpose(A_enc)
    A_dec_t = jnp.transpose(A)

    def norms(adj, adj_t):
        deg_out = jnp.maximum(jnp.sum(adj, axis=1, keepdims=True), 1.0)     # [M, 1]
        deg_in = jnp.maximum(jnp.sum(adj_t, axis=1, keepdims=True), 1.0)    # [M, 1]
        return lax.rsqrt(deg_out), lax.rsqrt(deg_in)

    enc_no, enc_ni = norms(A_enc, A_enc_t)
    dec_no, dec_ni = norms(A, A_dec_t)
    A_enc_t_bf = A_enc_t.astype(jnp.bfloat16)
    A_dec_t_bf = A_dec_t.astype(jnp.bfloat16)

    def gcn(adj_t_bf, n_out, n_in, h, w_bf, b, res_w_bf, identity_res, use_act):
        # Matches the spec's GraphConv: fc(A^T (h * out^-1/2)) * in^-1/2 + res(h); activation.
        fs = (h * n_out).astype(jnp.bfloat16)
        agg = jnp.dot(adj_t_bf, fs, preferred_element_type=jnp.float32)
        rst = jnp.dot(agg.astype(jnp.bfloat16), w_bf, preferred_element_type=jnp.float32) + b
        rst = rst * n_in
        if res_w_bf is not None:          # linear residual (in_dim != out_dim)
            rst = rst + jnp.dot(h.astype(jnp.bfloat16), res_w_bf,
                                preferred_element_type=jnp.float32)
        elif identity_res:                # identity residual added in f32 (no bf16 rounding of h)
            rst = rst + h
        if use_act:
            rst = jnp.maximum(rst, 0.0)   # ReLU
        return rst

    # encoder (encoding=True): both layers residual + ReLU (layer0 linear res, layer1 identity res)
    h = gcn(A_enc_t_bf, enc_no, enc_ni, X, ew0_ref[...], eb0_ref[...], er0_ref[...], False, True)
    h = gcn(A_enc_t_bf, enc_no, enc_ni, h, ew1_ref[...], eb1_ref[...], None, True, True)
    # encoder_to_decoder (no bias)
    rep = jnp.dot(h.astype(jnp.bfloat16), e2d_ref[...], preferred_element_type=jnp.float32)
    # decoder: layer0 identity residual + ReLU, layer1 no residual / no activation
    h = gcn(A_dec_t_bf, dec_no, dec_ni, rep, dw0_ref[...], db0_ref[...], None, True, True)
    rec = gcn(A_dec_t_bf, dec_no, dec_ni, h, dw1_ref[...], db1_ref[...], None, False, False)

    # edge-endpoint gather via one-hot selection matmuls in f32 (exact gather, idle MXU)
    pa = jnp.dot(spa_ref[...], rec, preferred_element_type=jnp.float32)    # [Ep_pad, Hp]
    pb = jnp.dot(spb_ref[...], rec, preferred_element_type=jnp.float32)
    na = jnp.dot(sna_ref[...], rec, preferred_element_type=jnp.float32)    # [En_pad, Hp]
    nb = jnp.dot(snb_ref[...], rec, preferred_element_type=jnp.float32)

    def cosine(a, b):
        dot = jnp.sum(a * b, axis=1, keepdims=True)
        na_ = jnp.sqrt(jnp.sum(a * a, axis=1, keepdims=True))
        nb_ = jnp.sqrt(jnp.sum(b * b, axis=1, keepdims=True))
        # torch.nn.CosineSimilarity(dim=1, eps=1e-6): clamp each norm separately
        return dot / (jnp.maximum(na_, 1e-6) * jnp.maximum(nb_, 1e-6))

    cp = cosine(pa, pb)                               # [Ep_pad, 1]
    cn = cosine(na, nb)                               # [En_pad, 1]
    cp_ref[...] = cp
    cn_ref[...] = cn

    # BCEWithLogits mean over the n_pos + n_neg real edges (padded rows masked out)
    # target 1 -> softplus(-z); target 0 -> softplus(z)
    pid = lax.broadcasted_iota(jnp.int32, cp.shape, 0)
    nid = lax.broadcasted_iota(jnp.int32, cn.shape, 0)
    lp = jnp.where(pid < n_pos,
                   jnp.maximum(-cp, 0.0) + jnp.log1p(jnp.exp(-jnp.abs(cp))), 0.0)
    ln = jnp.where(nid < n_neg,
                   jnp.maximum(cn, 0.0) + jnp.log1p(jnp.exp(-jnp.abs(cn))), 0.0)
    total = jnp.sum(lp, axis=0, keepdims=True) + jnp.sum(ln, axis=0, keepdims=True)   # [1, 1]
    loss_ref[...] = total * (1.0 / float(n_pos + n_neg))


def _sample_normalize_kernel(adj_ref, u_ref, o_ref, *, temperature):
    """sample_adj (alpha==1, RelaxedBernoulliStraightThrough forward) + normalize_adj('gcn')."""
    adj = adj_ref[...]                                # predicted binary adjacency (adj_rec)
    u = u_ref[...]                                    # uniform(0,1) noise
    n = adj.shape[0]

    m = jnp.max(adj, axis=(0, 1), keepdims=True)
    probs = adj / jnp.maximum(m, 1e-12)               # adj_logits / max(adj_logits)
    probs = jnp.clip(probs, 1e-6, 1.0 - 1e-6)         # keeps logits finite; same hard samples
    logits = jnp.log(probs) - jnp.log1p(-probs)
    noise = jnp.log(u) - jnp.log1p(-u)                # logistic reparameterization
    soft = jax.nn.sigmoid((logits + noise) / temperature)   # EUP sigmoid

    rows = lax.broadcasted_iota(jnp.int32, (n, n), 0)
    cols = lax.broadcasted_iota(jnp.int32, (n, n), 1)
    tri = jnp.where((soft >= 0.5) & (cols > rows), 1.0, 0.0)   # straight-through fwd + .triu(1)
    sym = tri + jnp.transpose(tri)                              # adj + adj.T
    a = jnp.where(rows == cols, 1.0, sym)                       # fill_diagonal_(1)

    # D^-1/2 @ A @ D^-1/2 with a single degree reduction: `a` is symmetric, so
    #   (a * d^-1/2)_ij^T * d^-1/2 = a_ij * d_i^-1/2 * d_j^-1/2.
    dinv = lax.rsqrt(jnp.sum(a, axis=0, keepdims=True))         # [1, N] (sublane reduce)
    o_ref[...] = jnp.transpose(a * dinv) * dinv


# ----------------------------------------------------------------------------
# pallas_call wrappers
# ----------------------------------------------------------------------------

def fused_mgae_with_loss(a_pos, a_neg, x, p, pos_src, pos_dst, neg_src, neg_dst):
    """Single pallas_call: encoder -> enc2dec -> decoder for both graphs + cosine + BCE loss."""
    N, din = x.shape
    hid = p['enc_w0'].shape[1]
    dp = _ceil_to(din, _LANE)
    hp = _ceil_to(hid, _LANE)
    M = 2 * N                                           # pos graph nodes 0..N-1, neg graph N..2N-1

    # block-diagonal adjacency folds both graphs into one set of matmuls (2x MXU M-fill,
    # one grid step on single-TC v5e/v6e)
    A_blk = jnp.zeros((M, M), jnp.float32)
    A_blk = A_blk.at[:N, :N].set(a_pos)
    A_blk = A_blk.at[N:, N:].set(a_neg)
    X2 = _pad2(jnp.concatenate([x, x], axis=0), M, dp)

    ew0 = _pad2(p['enc_w0'], dp, hp).astype(jnp.bfloat16)
    eb0 = _pad2(p['enc_b0'], 1, hp)
    er0 = _pad2(p['enc_res0'], dp, hp).astype(jnp.bfloat16)
    ew1 = _pad2(p['enc_w1'], hp, hp).astype(jnp.bfloat16)
    eb1 = _pad2(p['enc_b1'], 1, hp)
    e2d = _pad2(p['e2d_w'], hp, hp).astype(jnp.bfloat16)
    dw0 = _pad2(p['dec_w0'], hp, hp).astype(jnp.bfloat16)
    db0 = _pad2(p['dec_b0'], 1, hp)
    dw1 = _pad2(p['dec_w1'], hp, hp).astype(jnp.bfloat16)
    db1 = _pad2(p['dec_b1'], 1, hp)

    # one-hot selection matrices for the in-kernel edge-endpoint gather (f32 -> exact gather)
    n_pos = int(pos_src.shape[0])
    n_neg = int(neg_src.shape[0])
    ep_pad = _ceil_to(n_pos, 8)
    en_pad = _ceil_to(n_neg, 8)

    def onehot_rows(idx, pad_rows):
        sel = jax.nn.one_hot(idx, M, dtype=jnp.float32)             # [E, M]
        return jnp.pad(sel, ((0, pad_rows - idx.shape[0]), (0, 0)))

    spa = onehot_rows(pos_src, ep_pad)
    spb = onehot_rows(pos_dst, ep_pad)
    sna = onehot_rows(neg_src + N, en_pad)              # neg graph lives in rows N..2N-1
    snb = onehot_rows(neg_dst + N, en_pad)

    kernel = functools.partial(_fused_forward_kernel, n_pos=n_pos, n_neg=n_neg)
    cp, cn, loss = pl.pallas_call(
        kernel,
        out_shape=(jax.ShapeDtypeStruct((ep_pad, 1), jnp.float32),
                   jax.ShapeDtypeStruct((en_pad, 1), jnp.float32),
                   jax.ShapeDtypeStruct((1, 1), jnp.float32)),
        grid=(1,),
        in_specs=[_full_spec((M, M)), _full_spec((M, dp)),
                  _full_spec((dp, hp)), _full_spec((1, hp)), _full_spec((dp, hp)),
                  _full_spec((hp, hp)), _full_spec((1, hp)),
                  _full_spec((hp, hp)),
                  _full_spec((hp, hp)), _full_spec((1, hp)),
                  _full_spec((hp, hp)), _full_spec((1, hp)),
                  _full_spec((ep_pad, M)), _full_spec((ep_pad, M)),
                  _full_spec((en_pad, M)), _full_spec((en_pad, M))],
        out_specs=(_full_spec((ep_pad, 1)), _full_spec((en_pad, 1)), _full_spec((1, 1))),
        compiler_params=pltpu.CompilerParams(
            dimension_semantics=("arbitrary",),
            vmem_limit_bytes=_vmem_limit_bytes()),
    )(A_blk, X2, ew0, eb0, er0, ew1, eb1, e2d, dw0, db0, dw1, db1, spa, spb, sna, snb)
    return cp[:n_pos, 0], cn[:n_neg, 0], loss[0, 0]


def sample_and_normalize(adj_rec, u, *, temperature):
    N = adj_rec.shape[0]
    kernel = functools.partial(_sample_normalize_kernel, temperature=float(temperature))
    return pl.pallas_call(
        kernel,
        out_shape=jax.ShapeDtypeStruct((N, N), jnp.float32),
        grid=(1,),
        in_specs=[_full_spec((N, N)), _full_spec((N, N))],
        out_specs=_full_spec((N, N)),
        compiler_params=pltpu.CompilerParams(
            dimension_semantics=("arbitrary",),
            vmem_limit_bytes=_vmem_limit_bytes()),
    )(adj_rec, u)


# ----------------------------------------------------------------------------
# Model: parameters + forward (AugGraph with encoder_type=decoder_type='gcn',
#        num_layers=2, activation='relu', norm=None, residual=True, alpha=1,
#        sample_type='add_sample', gnnlayer_type='gcn', feat_drop=0 (eval))
# ----------------------------------------------------------------------------

def init_params(key, in_dim, hidden):
    ks = jax.random.split(key, 6)

    def lin(k, fin, fout):
        return (jax.random.normal(k, (fin, fout), jnp.float32) / np.sqrt(fin)).astype(jnp.float32)

    return dict(
        # encoder GCN (encoding=True -> both layers: residual + ReLU)
        enc_w0=lin(ks[0], in_dim, hidden), enc_b0=jnp.zeros((1, hidden), jnp.float32),
        enc_res0=lin(ks[1], in_dim, hidden),                  # Linear residual (in_dim != hidden)
        enc_w1=lin(ks[2], hidden, hidden), enc_b1=jnp.zeros((1, hidden), jnp.float32),
        # layer-1 residual is Identity -> handled in-kernel (no matrix)
        # encoder_to_decoder (no bias)
        e2d_w=lin(ks[3], hidden, hidden),
        # decoder GCN (decoding -> last layer: no residual, no activation)
        dec_w0=lin(ks[4], hidden, hidden), dec_b0=jnp.zeros((1, hidden), jnp.float32),
        dec_w1=lin(ks[5], hidden, hidden), dec_b1=jnp.zeros((1, hidden), jnp.float32),
    )


def aug_graph_forward(x, params, pos_src, pos_dst, neg_src, neg_dst, noise_u,
                      temperature=0.2):
    """AugGraph.forward: returns (loss, adj_new_normed)."""
    N = x.shape[0]
    a_pos = jnp.zeros((N, N), jnp.float32).at[pos_src, pos_dst].set(1.0)
    a_neg = jnp.zeros((N, N), jnp.float32).at[neg_src, neg_dst].set(1.0)

    # fused MGAE chain + cosine + BCE loss (one kernel; rec never leaves VMEM)
    cos_pos, cos_neg, loss = fused_mgae_with_loss(
        a_pos, a_neg, x, params, pos_src, pos_dst, neg_src, neg_dst)

    # reconstructed_adj: threshold 0.5 per edge (pos edges first, then neg edges) -- XLA scatter
    adj_rec = jnp.zeros((N, N), jnp.float32)
    adj_rec = adj_rec.at[pos_src, pos_dst].set((cos_pos >= 0.5).astype(jnp.float32))
    adj_rec = adj_rec.at[neg_src, neg_dst].set((cos_neg >= 0.5).astype(jnp.float32))

    # sample_adj (alpha == 1) + normalize_adj ('gcn')
    adj_new_normed = sample_and_normalize(adj_rec, noise_u, temperature=temperature)
    return loss, adj_new_normed


# ----------------------------------------------------------------------------
# main
# ----------------------------------------------------------------------------

if __name__ == "__main__":
    N, in_dim, num_hidden, num_classes = 16, 8, 32, 4   # num_classes unused in forward
    mask_rate, temperature = 0.3, 0.2

    key = jax.random.PRNGKey(0)
    kx, kp, ku = jax.random.split(key, 3)
    x = jax.random.normal(kx, (N, in_dim), dtype=jnp.float32)
    params = init_params(kp, in_dim, num_hidden)
    noise_u = jax.random.uniform(ku, (N, N), dtype=jnp.float32,
                                 minval=1e-6, maxval=1.0 - 1e-6)

    # deterministic host-side graph + edge masking (torch.randperm / randint analogue)
    rng = np.random.default_rng(0)
    upper = (rng.random((N, N)) < 0.3) & np.triu(np.ones((N, N), bool), 1)
    adj_np = (upper | upper.T).astype(np.float32)
    src_all, dst_all = np.nonzero(adj_np)
    num_edges = src_all.shape[0]
    num_mask = int(mask_rate * num_edges)
    assert num_mask > 0
    perm = rng.permutation(num_edges)
    pos_src = jnp.asarray(src_all[perm[:num_mask]], jnp.int32)
    pos_dst = jnp.asarray(dst_all[perm[:num_mask]], jnp.int32)

    # negative edges: resample whole batch until no self-pairs (matches torch while-loop)
    while True:
        n1 = rng.integers(0, N, num_mask)
        n2 = rng.integers(0, N, num_mask)
        if not np.any(n1 == n2):
            break
    neg_src = jnp.asarray(n1, jnp.int32)
    neg_dst = jnp.asarray(n2, jnp.int32)

    loss, adj_new_normed = aug_graph_forward(
        x, params, pos_src, pos_dst, neg_src, neg_dst, noise_u, temperature=temperature)
    jax.block_until_ready((loss, adj_new_normed))
    loss_item = {'loss': float(loss)}   # .item() analogue
    print("KERNEL_OK")
</pallas_src>

<mosaic_0001>
module attributes {stable_mosaic.version = 11 : i64} {
  func.func @_fused_forward_kernel(%arg0: i32, %arg1: memref<32x32xf32, #tpu.memory_space<vmem>>, %arg2: memref<32x128xf32, #tpu.memory_space<vmem>>, %arg3: memref<128x128xbf16, #tpu.memory_space<vmem>>, %arg4: memref<1x128xf32, #tpu.memory_space<vmem>>, %arg5: memref<128x128xbf16, #tpu.memory_space<vmem>>, %arg6: memref<128x128xbf16, #tpu.memory_space<vmem>>, %arg7: memref<1x128xf32, #tpu.memory_space<vmem>>, %arg8: memref<128x128xbf16, #tpu.memory_space<vmem>>, %arg9: memref<128x128xbf16, #tpu.memory_space<vmem>>, %arg10: memref<1x128xf32, #tpu.memory_space<vmem>>, %arg11: memref<128x128xbf16, #tpu.memory_space<vmem>>, %arg12: memref<1x128xf32, #tpu.memory_space<vmem>>, %arg13: memref<24x32xf32, #tpu.memory_space<vmem>>, %arg14: memref<24x32xf32, #tpu.memory_space<vmem>>, %arg15: memref<24x32xf32, #tpu.memory_space<vmem>>, %arg16: memref<24x32xf32, #tpu.memory_space<vmem>>, %arg17: memref<24x1xf32, #tpu.memory_space<vmem>>, %arg18: memref<24x1xf32, #tpu.memory_space<vmem>>, %arg19: memref<1x1xf32, #tpu.memory_space<vmem>>) attributes {dimension_semantics = [#tpu.dimension_semantics<arbitrary>], iteration_bounds = array<i64: 1>, scalar_prefetch = 0 : i64, scratch_operands = 0 : i64, tpu.core_type = #tpu.core_type<tc>, window_params = [{pipeline_mode = #tpu.pipeline_mode<synchronous>, transform_indices = @transform_0, window_bounds = array<i64: 32, 32>}, {pipeline_mode = #tpu.pipeline_mode<synchronous>, transform_indices = @transform_1, window_bounds = array<i64: 32, 128>}, {pipeline_mode = #tpu.pipeline_mode<synchronous>, transform_indices = @transform_2, window_bounds = array<i64: 128, 128>}, {pipeline_mode = #tpu.pipeline_mode<synchronous>, transform_indices = @transform_3, window_bounds = array<i64: 1, 128>}, {pipeline_mode = #tpu.pipeline_mode<synchronous>, transform_indices = @transform_4, window_bounds = array<i64: 128, 128>}, {pipeline_mode = #tpu.pipeline_mode<synchronous>, transform_indices = @transform_5, window_bounds = array<i64: 128, 128>}, {pipeline_mode = #tpu.pipeline_mode<synchronous>, transform_indices = @transform_6, window_bounds = array<i64: 1, 128>}, {pipeline_mode = #tpu.pipeline_mode<synchronous>, transform_indices = @transform_7, window_bounds = array<i64: 128, 128>}, {pipeline_mode = #tpu.pipeline_mode<synchronous>, transform_indices = @transform_8, window_bounds = array<i64: 128, 128>}, {pipeline_mode = #tpu.pipeline_mode<synchronous>, transform_indices = @transform_9, window_bounds = array<i64: 1, 128>}, {pipeline_mode = #tpu.pipeline_mode<synchronous>, transform_indices = @transform_10, window_bounds = array<i64: 128, 128>}, {pipeline_mode = #tpu.pipeline_mode<synchronous>, transform_indices = @transform_11, window_bounds = array<i64: 1, 128>}, {pipeline_mode = #tpu.pipeline_mode<synchronous>, transform_indices = @transform_12, window_bounds = array<i64: 24, 32>}, {pipeline_mode = #tpu.pipeline_mode<synchronous>, transform_indices = @transform_13, window_bounds = array<i64: 24, 32>}, {pipeline_mode = #tpu.pipeline_mode<synchronous>, transform_indices = @transform_14, window_bounds = array<i64: 24, 32>}, {pipeline_mode = #tpu.pipeline_mode<synchronous>, transform_indices = @transform_15, window_bounds = array<i64: 24, 32>}, {pipeline_mode = #tpu.pipeline_mode<synchronous>, transform_indices = @transform_16, window_bounds = array<i64: 24, 1>}, {pipeline_mode = #tpu.pipeline_mode<synchronous>, transform_indices = @transform_17, window_bounds = array<i64: 24, 1>}, {pipeline_mode = #tpu.pipeline_mode<synchronous>, transform_indices = @transform_18, window_bounds = array<i64: 1, 1>}]} {
    %c0 = arith.constant 0 : index
    %c0_0 = arith.constant 0 : index
    %0 = vector.load %arg1[%c0, %c0_0] : memref<32x32xf32, #tpu.memory_space<vmem>>, vector<32x32xf32>
    %c0_1 = arith.constant 0 : index
    %c0_2 = arith.constant 0 : index
    %1 = vector.load %arg2[%c0_1, %c0_2] : memref<32x128xf32, #tpu.memory_space<vmem>>, vector<32x128xf32>
    %2 = tpu.iota {dimensions = array<i32: 0>} : vector<32x32xi32>
    %3 = tpu.iota {dimensions = array<i32: 1>} : vector<32x32xi32>
    %4 = arith.cmpi eq, %2, %3 : vector<32x32xi32>
    %cst = arith.constant 1.000000e+00 : f32
    %5 = vector.broadcast %cst : f32 to vector<32x32xf32>
    %6 = arith.select %4, %5, %0 : vector<32x32xi1>, vector<32x32xf32>
    %7 = tpu.transpose %6, [1, 0] : vector<32x32xf32> -> vector<32x32xf32>
    %8 = tpu.transpose %0, [1, 0] : vector<32x32xf32> -> vector<32x32xf32>
    %cst_3 = arith.constant dense<0.000000e+00> : vector<32xf32>
    %9 = vector.multi_reduction <add>, %6, %cst_3 [1] : vector<32x32xf32> to vector<32xf32>
    %10 = vector.shape_cast %9 : vector<32xf32> to vector<32x1xf32>
    %cst_4 = arith.constant 1.000000e+00 : f32
    %11 = vector.broadcast %cst_4 : f32 to vector<32x1xf32>
    %12 = arith.maximumf %10, %11 : vector<32x1xf32>
    %cst_5 = arith.constant dense<0.000000e+00> : vector<32xf32>
    %13 = vector.multi_reduction <add>, %7, %cst_5 [1] : vector<32x32xf32> to vector<32xf32>
    %14 = vector.shape_cast %13 : vector<32xf32> to vector<32x1xf32>
    %cst_6 = arith.constant 1.000000e+00 : f32
    %15 = vector.broadcast %cst_6 : f32 to vector<32x1xf32>
    %16 = arith.maximumf %14, %15 : vector<32x1xf32>
    %17 = math.rsqrt %12 : vector<32x1xf32>
    %18 = math.rsqrt %16 : vector<32x1xf32>
    %cst_7 = arith.constant dense<0.000000e+00> : vector<32xf32>
    %19 = vector.multi_reduction <add>, %0, %cst_7 [1] : vector<32x32xf32> to vector<32xf32>
    %20 = vector.shape_cast %19 : vector<32xf32> to vector<32x1xf32>
    %cst_8 = arith.constant 1.000000e+00 : f32
    %21 = vector.broadcast %cst_8 : f32 to vector<32x1xf32>
    %22 = arith.maximumf %20, %21 : vector<32x1xf32>
    %cst_9 = arith.constant dense<0.000000e+00> : vector<32xf32>
    %23 = vector.multi_reduction <add>, %8, %cst_9 [1] : vector<32x32xf32> to vector<32xf32>
    %24 = vector.shape_cast %23 : vector<32xf32> to vector<32x1xf32>
    %cst_10 = arith.constant 1.000000e+00 : f32
    %25 = vector.broadcast %cst_10 : f32 to vector<32x1xf32>
    %26 = arith.maximumf %24, %25 : vector<32x1xf32>
    %27 = math.rsqrt %22 : vector<32x1xf32>
    %28 = math.rsqrt %26 : vector<32x1xf32>
    %29 = arith.truncf %7 : vector<32x32xf32> to vector<32x32xbf16>
    %30 = arith.truncf %8 : vector<32x32xf32> to vector<32x32xbf16>
    %c0_11 = arith.constant 0 : index
    %c0_12 = arith.constant 0 : index
    %31 = vector.load %arg3[%c0_11, %c0_12] : memref<128x128xbf16, #tpu.memory_space<vmem>>, vector<128x128xbf16>
    %c0_13 = arith.constant 0 : index
    %c0_14 = arith.constant 0 : index
    %32 = vector.load %arg4[%c0_13, %c0_14] : memref<1x128xf32, #tpu.memory_space<vmem>>, vector<1x128xf32>
    %c0_15 = arith.constant 0 : index
    %c0_16 = arith.constant 0 : index
    %33 = vector.load %arg5[%c0_15, %c0_16] : memref<128x128xbf16, #tpu.memory_space<vmem>>, vector<128x128xbf16>
    %34 = vector.broadcast %17 : vector<32x1xf32> to vector<32x128xf32>
    %35 = arith.mulf %1, %34 : vector<32x128xf32>
    %36 = arith.truncf %35 : vector<32x128xf32> to vector<32x128xbf16>
    %cst_17 = arith.constant dense<0.000000e+00> : vector<32x128xf32>
    %37 = tpu.matmul %29, %36, %cst_17 {dimension_numbers = #tpu.dot_dimension_numbers<[1], [0], [0], [1], [0, 0, 1, 1], [], []>} : vector<32x32xbf16>, vector<32x128xbf16>, vector<32x128xf32> -> vector<32x128xf32>
    %38 = arith.truncf %37 : vector<32x128xf32> to vector<32x128xbf16>
    %cst_18 = arith.constant dense<0.000000e+00> : vector<32x128xf32>
    %39 = tpu.matmul %38, %31, %cst_18 {dimension_numbers = #tpu.dot_dimension_numbers<[1], [0], [0], [1], [0, 0, 1, 1], [], []>} : vector<32x128xbf16>, vector<128x128xbf16>, vector<32x128xf32> -> vector<32x128xf32>
    %40 = vector.broadcast %32 : vector<1x128xf32> to vector<32x128xf32>
    %41 = arith.addf %39, %40 : vector<32x128xf32>
    %42 = vector.broadcast %18 : vector<32x1xf32> to vector<32x128xf32>
    %43 = arith.mulf %41, %42 : vector<32x128xf32>
    %44 = arith.truncf %1 : vector<32x128xf32> to vector<32x128xbf16>
    %cst_19 = arith.constant dense<0.000000e+00> : vector<32x128xf32>
    %45 = tpu.matmul %44, %33, %cst_19 {dimension_numbers = #tpu.dot_dimension_numbers<[1], [0], [0], [1], [0, 0, 1, 1], [], []>} : vector<32x128xbf16>, vector<128x128xbf16>, vector<32x128xf32> -> vector<32x128xf32>
    %46 = arith.addf %43, %45 : vector<32x128xf32>
    %cst_20 = arith.constant 0.000000e+00 : f32
    %47 = vector.broadcast %cst_20 : f32 to vector<32x128xf32>
    %48 = arith.maximumf %46, %47 : vector<32x128xf32>
    %c0_21 = arith.constant 0 : index
    %c0_22 = arith.constant 0 : index
    %49 = vector.load %arg6[%c0_21, %c0_22] : memref<128x128xbf16, #tpu.memory_space<vmem>>, vector<128x128xbf16>
    %c0_23 = arith.constant 0 : index
    %c0_24 = arith.constant 0 : index
    %50 = vector.load %arg7[%c0_23, %c0_24] : memref<1x128xf32, #tpu.memory_space<vmem>>, vector<1x128xf32>
    %51 = vector.broadcast %17 : vector<32x1xf32> to vector<32x128xf32>
    %52 = arith.mulf %48, %51 : vector<32x128xf32>
    %53 = arith.truncf %52 : vector<32x128xf32> to vector<32x128xbf16>
    %cst_25 = arith.constant dense<0.000000e+00> : vector<32x128xf32>
    %54 = tpu.matmul %29, %53, %cst_25 {dimension_numbers = #tpu.dot_dimension_numbers<[1], [0], [0], [1], [0, 0, 1, 1], [], []>} : vector<32x32xbf16>, vector<32x128xbf16>, vector<32x128xf32> -> vector<32x128xf32>
    %55 = arith.truncf %54 : vector<32x128xf32> to vector<32x128xbf16>
    %cst_26 = arith.constant dense<0.000000e+00> : vector<32x128xf32>
    %56 = tpu.matmul %55, %49, %cst_26 {dimension_numbers = #tpu.dot_dimension_numbers<[1], [0], [0], [1], [0, 0, 1, 1], [], []>} : vector<32x128xbf16>, vector<128x128xbf16>, vector<32x128xf32> -> vector<32x128xf32>
    %57 = vector.broadcast %50 : vector<1x128xf32> to vector<32x128xf32>
    %58 = arith.addf %56, %57 : vector<32x128xf32>
    %59 = vector.broadcast %18 : vector<32x1xf32> to vector<32x128xf32>
    %60 = arith.mulf %58, %59 : vector<32x128xf32>
    %61 = arith.addf %60, %48 : vector<32x128xf32>
    %cst_27 = arith.constant 0.000000e+00 : f32
    %62 = vector.broadcast %cst_27 : f32 to vector<32x128xf32>
    %63 = arith.maximumf %61, %62 : vector<32x128xf32>
    %64 = arith.truncf %63 : vector<32x128xf32> to vector<32x128xbf16>
    %c0_28 = arith.constant 0 : index
    %c0_29 = arith.constant 0 : index
    %65 = vector.load %arg8[%c0_28, %c0_29] : memref<128x128xbf16, #tpu.memory_space<vmem>>, vector<128x128xbf16>
    %cst_30 = arith.constant dense<0.000000e+00> : vector<32x128xf32>
    %66 = tpu.matmul %64, %65, %cst_30 {dimension_numbers = #tpu.dot_dimension_numbers<[1], [0], [0], [1], [0, 0, 1, 1], [], []>} : vector<32x128xbf16>, vector<128x128xbf16>, vector<32x128xf32> -> vector<32x128xf32>
    %c0_31 = arith.constant 0 : index
    %c0_32 = arith.constant 0 : index
    %67 = vector.load %arg9[%c0_31, %c0_32] : memref<128x128xbf16, #tpu.memory_space<vmem>>, vector<128x128xbf16>
    %c0_33 = arith.constant 0 : index
    %c0_34 = arith.constant 0 : index
    %68 = vector.load %arg10[%c0_33, %c0_34] : memref<1x128xf32, #tpu.memory_space<vmem>>, vector<1x128xf32>
    %69 = vector.broadcast %27 : vector<32x1xf32> to vector<32x128xf32>
    %70 = arith.mulf %66, %69 : vector<32x128xf32>
    %71 = arith.truncf %70 : vector<32x128xf32> to vector<32x128xbf16>
    %cst_35 = arith.constant dense<0.000000e+00> : vector<32x128xf32>
    %72 = tpu.matmul %30, %71, %cst_35 {dimension_numbers = #tpu.dot_dimension_numbers<[1], [0], [0], [1], [0, 0, 1, 1], [], []>} : vector<32x32xbf16>, vector<32x128xbf16>, vector<32x128xf32> -> vector<32x128xf32>
    %73 = arith.truncf %72 : vector<32x128xf32> to vector<32x128xbf16>
    %cst_36 = arith.constant dense<0.000000e+00> : vector<32x128xf32>
    %74 = tpu.matmul %73, %67, %cst_36 {dimension_numbers = #tpu.dot_dimension_numbers<[1], [0], [0], [1], [0, 0, 1, 1], [], []>} : vector<32x128xbf16>, vector<128x128xbf16>, vector<32x128xf32> -> vector<32x128xf32>
    %75 = vector.broadcast %68 : vector<1x128xf32> to vector<32x128xf32>
    %76 = arith.addf %74, %75 : vector<32x128xf32>
    %77 = vector.broadcast %28 : vector<32x1xf32> to vector<32x128xf32>
    %78 = arith.mulf %76, %77 : vector<32x128xf32>
    %79 = arith.addf %78, %66 : vector<32x128xf32>
    %cst_37 = arith.constant 0.000000e+00 : f32
    %80 = vector.broadcast %cst_37 : f32 to vector<32x128xf32>
    %81 = arith.maximumf %79, %80 : vector<32x128xf32>
    %c0_38 = arith.constant 0 : index
    %c0_39 = arith.constant 0 : index
    %82 = vector.load %arg11[%c0_38, %c0_39] : memref<128x128xbf16, #tpu.memory_space<vmem>>, vector<128x128xbf16>
    %c0_40 = arith.constant 0 : index
    %c0_41 = arith.constant 0 : index
    %83 = vector.load %arg12[%c0_40, %c0_41] : memref<1x128xf32, #tpu.memory_space<vmem>>, vector<1x128xf32>
    %84 = vector.broadcast %27 : vector<32x1xf32> to vector<32x128xf32>
    %85 = arith.mulf %81, %84 : vector<32x128xf32>
    %86 = arith.truncf %85 : vector<32x128xf32> to vector<32x128xbf16>
    %cst_42 = arith.constant dense<0.000000e+00> : vector<32x128xf32>
    %87 = tpu.matmul %30, %86, %cst_42 {dimension_numbers = #tpu.dot_dimension_numbers<[1], [0], [0], [1], [0, 0, 1, 1], [], []>} : vector<32x32xbf16>, vector<32x128xbf16>, vector<32x128xf32> -> vector<32x128xf32>
    %88 = arith.truncf %87 : vector<32x128xf32> to vector<32x128xbf16>
    %cst_43 = arith.constant dense<0.000000e+00> : vector<32x128xf32>
    %89 = tpu.matmul %88, %82, %cst_43 {dimension_numbers = #tpu.dot_dimension_numbers<[1], [0], [0], [1], [0, 0, 1, 1], [], []>} : vector<32x128xbf16>, vector<128x128xbf16>, vector<32x128xf32> -> vector<32x128xf32>
    %90 = vector.broadcast %83 : vector<1x128xf32> to vector<32x128xf32>
    %91 = arith.addf %89, %90 : vector<32x128xf32>
    %92 = vector.broadcast %28 : vector<32x1xf32> to vector<32x128xf32>
    %93 = arith.mulf %91, %92 : vector<32x128xf32>
    %c0_44 = arith.constant 0 : index
    %c0_45 = arith.constant 0 : index
    %94 = vector.load %arg13[%c0_44, %c0_45] : memref<24x32xf32, #tpu.memory_space<vmem>>, vector<24x32xf32>
    %cst_46 = arith.constant dense<0.000000e+00> : vector<24x128xf32>
    %95 = tpu.matmul %94, %93, %cst_46 {dimension_numbers = #tpu.dot_dimension_numbers<[1], [0], [0], [1], [0, 0, 1, 1], [], []>} : vector<24x32xf32>, vector<32x128xf32>, vector<24x128xf32> -> vector<24x128xf32>
    %c0_47 = arith.constant 0 : index
    %c0_48 = arith.constant 0 : index
    %96 = vector.load %arg14[%c0_47, %c0_48] : memref<24x32xf32, #tpu.memory_space<vmem>>, vector<24x32xf32>
    %cst_49 = arith.constant dense<0.000000e+00> : vector<24x128xf32>
    %97 = tpu.matmul %96, %93, %cst_49 {dimension_numbers = #tpu.dot_dimension_numbers<[1], [0], [0], [1], [0, 0, 1, 1], [], []>} : vector<24x32xf32>, vector<32x128xf32>, vector<24x128xf32> -> vector<24x128xf32>
    %c0_50 = arith.constant 0 : index
    %c0_51 = arith.constant 0 : index
    %98 = vector.load %arg15[%c0_50, %c0_51] : memref<24x32xf32, #tpu.memory_space<vmem>>, vector<24x32xf32>
    %cst_52 = arith.constant dense<0.000000e+00> : vector<24x128xf32>
    %99 = tpu.matmul %98, %93, %cst_52 {dimension_numbers = #tpu.dot_dimension_numbers<[1], [0], [0], [1], [0, 0, 1, 1], [], []>} : vector<24x32xf32>, vector<32x128xf32>, vector<24x128xf32> -> vector<24x128xf32>
    %c0_53 = arith.constant 0 : index
    %c0_54 = arith.constant 0 : index
    %100 = vector.load %arg16[%c0_53, %c0_54] : memref<24x32xf32, #tpu.memory_space<vmem>>, vector<24x32xf32>
    %cst_55 = arith.constant dense<0.000000e+00> : vector<24x128xf32>
    %101 = tpu.matmul %100, %93, %cst_55 {dimension_numbers = #tpu.dot_dimension_numbers<[1], [0], [0], [1], [0, 0, 1, 1], [], []>} : vector<24x32xf32>, vector<32x128xf32>, vector<24x128xf32> -> vector<24x128xf32>
    %102 = arith.mulf %95, %97 : vector<24x128xf32>
    %cst_56 = arith.constant dense<0.000000e+00> : vector<24xf32>
    %103 = vector.multi_reduction <add>, %102, %cst_56 [1] : vector<24x128xf32> to vector<24xf32>
    %104 = vector.shape_cast %103 : vector<24xf32> to vector<24x1xf32>
    %105 = arith.mulf %95, %95 : vector<24x128xf32>
    %cst_57 = arith.constant dense<0.000000e+00> : vector<24xf32>
    %106 = vector.multi_reduction <add>, %105, %cst_57 [1] : vector<24x128xf32> to vector<24xf32>
    %107 = vector.shape_cast %106 : vector<24xf32> to vector<24x1xf32>
    %108 = math.sqrt %107 : vector<24x1xf32>
    %109 = arith.mulf %97, %97 : vector<24x128xf32>
    %cst_58 = arith.constant dense<0.000000e+00> : vector<24xf32>
    %110 = vector.multi_reduction <add>, %109, %cst_58 [1] : vector<24x128xf32> to vector<24xf32>
    %111 = vector.shape_cast %110 : vector<24xf32> to vector<24x1xf32>
    %112 = math.sqrt %111 : vector<24x1xf32>
    %cst_59 = arith.constant 9.99999997E-7 : f32
    %113 = vector.broadcast %cst_59 : f32 to vector<24x1xf32>
    %114 = arith.maximumf %108, %113 : vector<24x1xf32>
    %cst_60 = arith.constant 9.99999997E-7 : f32
    %115 = vector.broadcast %cst_60 : f32 to vector<24x1xf32>
    %116 = arith.maximumf %112, %115 : vector<24x1xf32>
    %117 = arith.mulf %114, %116 : vector<24x1xf32>
    %118 = arith.divf %104, %117 : vector<24x1xf32>
    %119 = arith.mulf %99, %101 : vector<24x128xf32>
    %cst_61 = arith.constant dense<0.000000e+00> : vector<24xf32>
    %120 = vector.multi_reduction <add>, %119, %cst_61 [1] : vector<24x128xf32> to vector<24xf32>
    %121 = vector.shape_cast %120 : vector<24xf32> to vector<24x1xf32>
    %122 = arith.mulf %99, %99 : vector<24x128xf32>
    %cst_62 = arith.constant dense<0.000000e+00> : vector<24xf32>
    %123 = vector.multi_reduction <add>, %122, %cst_62 [1] : vector<24x128xf32> to vector<24xf32>
    %124 = vector.shape_cast %123 : vector<24xf32> to vector<24x1xf32>
    %125 = math.sqrt %124 : vector<24x1xf32>
    %126 = arith.mulf %101, %101 : vector<24x128xf32>
    %cst_63 = arith.constant dense<0.000000e+00> : vector<24xf32>
    %127 = vector.multi_reduction <add>, %126, %cst_63 [1] : vector<24x128xf32> to vector<24xf32>
    %128 = vector.shape_cast %127 : vector<24xf32> to vector<24x1xf32>
    %129 = math.sqrt %128 : vector<24x1xf32>
    %cst_64 = arith.constant 9.99999997E-7 : f32
    %130 = vector.broadcast %cst_64 : f32 to vector<24x1xf32>
    %131 = arith.maximumf %125, %130 : vector<24x1xf32>
    %cst_65 = arith.constant 9.99999997E-7 : f32
    %132 = vector.broadcast %cst_65 : f32 to vector<24x1xf32>
    %133 = arith.maximumf %129, %132 : vector<24x1xf32>
    %134 = arith.mulf %131, %133 : vector<24x1xf32>
    %135 = arith.divf %121, %134 : vector<24x1xf32>
    %c0_66 = arith.constant 0 : index
    %c0_67 = arith.constant 0 : index
    %136 = vector.load %arg17[%c0_66, %c0_67] : memref<24x1xf32, #tpu.memory_space<vmem>>, vector<24x1xf32>
    tpu.vector_store %arg17[%c0_66, %c0_67], %118 {strides = array<i32>} : memref<24x1xf32, #tpu.memory_space<vmem>>, vector<24x1xf32>,
    %c0_68 = arith.constant 0 : index
    %c0_69 = arith.constant 0 : index
    %137 = vector.load %arg18[%c0_68, %c0_69] : memref<24x1xf32, #tpu.memory_space<vmem>>, vector<24x1xf32>
    tpu.vector_store %arg18[%c0_68, %c0_69], %135 {strides = array<i32>} : memref<24x1xf32, #tpu.memory_space<vmem>>, vector<24x1xf32>,
    %138 = tpu.iota {dimensions = array<i32: 0>} : vector<24x1xi32>
    %139 = tpu.iota {dimensions = array<i32: 0>} : vector<24x1xi32>
    %c20_i32 = arith.constant 20 : i32
    %140 = vector.broadcast %c20_i32 : i32 to vector<24x1xi32>
    %141 = arith.cmpi slt, %138, %140 : vector<24x1xi32>
    %cst_70 = arith.constant 0.000000e+00 : f32
    %142 = vector.broadcast %cst_70 : f32 to vector<24x1xf32>
    %143 = arith.subf %142, %118 : vector<24x1xf32>
    %cst_71 = arith.constant 0.000000e+00 : f32
    %144 = vector.broadcast %cst_71 : f32 to vector<24x1xf32>
    %145 = arith.maximumf %143, %144 : vector<24x1xf32>
    %146 = math.absf %118 : vector<24x1xf32>
    %cst_72 = arith.constant 0.000000e+00 : f32
    %147 = vector.broadcast %cst_72 : f32 to vector<24x1xf32>
    %148 = arith.subf %147, %146 : vector<24x1xf32>
    %149 = math.exp %148 : vector<24x1xf32>
    %150 = math.log1p %149 : vector<24x1xf32>
    %151 = arith.addf %145, %150 : vector<24x1xf32>
    %cst_73 = arith.constant 0.000000e+00 : f32
    %152 = vector.broadcast %cst_73 : f32 to vector<24x1xf32>
    %153 = arith.select %141, %151, %152 : vector<24x1xi1>, vector<24x1xf32>
    %c20_i32_74 = arith.constant 20 : i32
    %154 = vector.broadcast %c20_i32_74 : i32 to vector<24x1xi32>
    %155 = arith.cmpi slt, %139, %154 : vector<24x1xi32>
    %cst_75 = arith.constant 0.000000e+00 : f32
    %156 = vector.broadcast %cst_75 : f32 to vector<24x1xf32>
    %157 = arith.maximumf %135, %156 : vector<24x1xf32>
    %158 = math.absf %135 : vector<24x1xf32>
    %cst_76 = arith.constant 0.000000e+00 : f32
    %159 = vector.broadcast %cst_76 : f32 to vector<24x1xf32>
    %160 = arith.subf %159, %158 : vector<24x1xf32>
    %161 = math.exp %160 : vector<24x1xf32>
    %162 = math.log1p %161 : vector<24x1xf32>
    %163 = arith.addf %157, %162 : vector<24x1xf32>
    %cst_77 = arith.constant 0.000000e+00 : f32
    %164 = vector.broadcast %cst_77 : f32 to vector<24x1xf32>
    %165 = arith.select %155, %163, %164 : vector<24x1xi1>, vector<24x1xf32>
    %cst_78 = arith.constant dense<0.000000e+00> : vector<1xf32>
    %166 = vector.multi_reduction <add>, %153, %cst_78 [0] : vector<24x1xf32> to vector<1xf32>
    %167 = vector.shape_cast %166 : vector<1xf32> to vector<1x1xf32>
    %cst_79 = arith.constant dense<0.000000e+00> : vector<1xf32>
    %168 = vector.multi_reduction <add>, %165, %cst_79 [0] : vector<24x1xf32> to vector<1xf32>
    %169 = vector.shape_cast %168 : vector<1xf32> to vector<1x1xf32>
    %170 = arith.addf %167, %169 : vector<1x1xf32>
    %cst_80 = arith.constant 2.500000e-02 : f32
    %171 = vector.broadcast %cst_80 : f32 to vector<1x1xf32>
    %172 = arith.mulf %170, %171 : vector<1x1xf32>
    %c0_81 = arith.constant 0 : index
    %c0_82 = arith.constant 0 : index
    %173 = vector.load %arg19[%c0_81, %c0_82] : memref<1x1xf32, #tpu.memory_space<vmem>>, vector<1x1xf32>
    tpu.vector_store %arg19[%c0_81, %c0_82], %172 {strides = array<i32>} : memref<1x1xf32, #tpu.memory_space<vmem>>, vector<1x1xf32>,
    return
  }
  func.func @transform_0(%arg0: i32) -> (i32, i32) {
    %c0_i32 = arith.constant 0 : i32
    %c0_i32_0 = arith.constant 0 : i32
    %c0_i32_1 = arith.constant 0 : i32
    return %c0_i32, %c0_i32_0 : i32, i32
  }
  func.func @transform_1(%arg0: i32) -> (i32, i32) {
    %c0_i32 = arith.constant 0 : i32
    %c0_i32_0 = arith.constant 0 : i32
    %c0_i32_1 = arith.constant 0 : i32
    return %c0_i32, %c0_i32_0 : i32, i32
  }
  func.func @transform_2(%arg0: i32) -> (i32, i32) {
    %c0_i32 = arith.constant 0 : i32
    %c0_i32_0 = arith.constant 0 : i32
    %c0_i32_1 = arith.constant 0 : i32
    return %c0_i32, %c0_i32_0 : i32, i32
  }
  func.func @transform_3(%arg0: i32) -> (i32, i32) {
    %c0_i32 = arith.constant 0 : i32
    %c0_i32_0 = arith.constant 0 : i32
    %c0_i32_1 = arith.constant 0 : i32
    return %c0_i32, %c0_i32_0 : i32, i32
  }
  func.func @transform_4(%arg0: i32) -> (i32, i32) {
    %c0_i32 = arith.constant 0 : i32
    %c0_i32_0 = arith.constant 0 : i32
    %c0_i32_1 = arith.constant 0 : i32
    return %c0_i32, %c0_i32_0 : i32, i32
  }
  func.func @transform_5(%arg0: i32) -> (i32, i32) {
    %c0_i32 = arith.constant 0 : i32
    %c0_i32_0 = arith.constant 0 : i32
    %c0_i32_1 = arith.constant 0 : i32
    return %c0_i32, %c0_i32_0 : i32, i32
  }
  func.func @transform_6(%arg0: i32) -> (i32, i32) {
    %c0_i32 = arith.constant 0 : i32
    %c0_i32_0 = arith.constant 0 : i32
    %c0_i32_1 = arith.constant 0 : i32
    return %c0_i32, %c0_i32_0 : i32, i32
  }
  func.func @transform_7(%arg0: i32) -> (i32, i32) {
    %c0_i32 = arith.constant 0 : i32
    %c0_i32_0 = arith.constant 0 : i32
    %c0_i32_1 = arith.constant 0 : i32
    return %c0_i32, %c0_i32_0 : i32, i32
  }
  func.func @transform_8(%arg0: i32) -> (i32, i32) {
    %c0_i32 = arith.constant 0 : i32
    %c0_i32_0 = arith.constant 0 : i32
    %c0_i32_1 = arith.constant 0 : i32
    return %c0_i32, %c0_i32_0 : i32, i32
  }
  func.func @transform_9(%arg0: i32) -> (i32, i32) {
    %c0_i32 = arith.constant 0 : i32
    %c0_i32_0 = arith.constant 0 : i32
    %c0_i32_1 = arith.constant 0 : i32
    return %c0_i32, %c0_i32_0 : i32, i32
  }
  func.func @transform_10(%arg0: i32) -> (i32, i32) {
    %c0_i32 = arith.constant 0 : i32
    %c0_i32_0 = arith.constant 0 : i32
    %c0_i32_1 = arith.constant 0 : i32
    return %c0_i32, %c0_i32_0 : i32, i32
  }
  func.func @transform_11(%arg0: i32) -> (i32, i32) {
    %c0_i32 = arith.constant 0 : i32
    %c0_i32_0 = arith.constant 0 : i32
    %c0_i32_1 = arith.constant 0 : i32
    return %c0_i32, %c0_i32_0 : i32, i32
  }
  func.func @transform_12(%arg0: i32) -> (i32, i32) {
    %c0_i32 = arith.constant 0 : i32
    %c0_i32_0 = arith.constant 0 : i32
    %c0_i32_1 = arith.constant 0 : i32
    return %c0_i32, %c0_i32_0 : i32, i32
  }
  func.func @transform_13(%arg0: i32) -> (i32, i32) {
    %c0_i32 = arith.constant 0 : i32
    %c0_i32_0 = arith.constant 0 : i32
    %c0_i32_1 = arith.constant 0 : i32
    return %c0_i32, %c0_i32_0 : i32, i32
  }
  func.func @transform_14(%arg0: i32) -> (i32, i32) {
    %c0_i32 = arith.constant 0 : i32
    %c0_i32_0 = arith.constant 0 : i32
    %c0_i32_1 = arith.constant 0 : i32
    return %c0_i32, %c0_i32_0 : i32, i32
  }
  func.func @transform_15(%arg0: i32) -> (i32, i32) {
    %c0_i32 = arith.constant 0 : i32
    %c0_i32_0 = arith.constant 0 : i32
    %c0_i32_1 = arith.constant 0 : i32
    return %c0_i32, %c0_i32_0 : i32, i32
  }
  func.func @transform_16(%arg0: i32) -> (i32, i32) {
    %c0_i32 = arith.constant 0 : i32
    %c0_i32_0 = arith.constant 0 : i32
    %c0_i32_1 = arith.constant 0 : i32
    return %c0_i32, %c0_i32_0 : i32, i32
  }
  func.func @transform_17(%arg0: i32) -> (i32, i32) {
    %c0_i32 = arith.constant 0 : i32
    %c0_i32_0 = arith.constant 0 : i32
    %c0_i32_1 = arith.constant 0 : i32
    return %c0_i32, %c0_i32_0 : i32, i32
  }
  func.func @transform_18(%arg0: i32) -> (i32, i32) {
    %c0_i32 = arith.constant 0 : i32
    %c0_i32_0 = arith.constant 0 : i32
    %c0_i32_1 = arith.constant 0 : i32
    return %c0_i32, %c0_i32_0 : i32, i32
  }
}

</mosaic_0001>

<bundles_post_ra>
// kernel: tpu_custom_call.1
= control target key start
LH: loop header
LB: loop body
LE: loop exit
PB: predicated region body
PF: predicated region fallthrough
CT: control target
= control target key end

     0   :  { %s3589_s0 = inlined_call_operand.hbm [shape: f32[32,32], index: 0, kind: input, shape index: {}]   ;;  %s3590_s1 = inlined_call_operand.hbm [shape: f32[32,128], index: 1, kind: input, shape index: {}]   ;;  %s3591_s2 = inlined_call_operand.hbm [shape: bf16[128,128], index: 2, kind: input, shape index: {}]   ;;  %s3592_s3 = inlined_call_operand.vmem [shape: f32[1,128], index: 3, kind: input, shape index: {}]   ;;  %s3593_s4 = inlined_call_operand.hbm [shape: bf16[128,128], index: 4, kind: input, shape index: {}]   ;;  %s3594_s5 = inlined_call_operand.hbm [shape: bf16[128,128], index: 5, kind: input, shape index: {}]   ;;  %s3595_s6 = inlined_call_operand.hbm [shape: f32[1,128], index: 6, kind: input, shape index: {}]   ;;  %s3596_s7 = inlined_call_operand.hbm [shape: bf16[128,128], index: 7, kind: input, shape index: {}]   ;;  %s3597_s8 = inlined_call_operand.hbm [shape: bf16[128,128], index: 8, kind: input, shape index: {}]   ;;  %s3598_s9 = inlined_call_operand.hbm [shape: f32[1,128], index: 9, kind: input, shape index: {}]   ;;  %s3599_s10 = inlined_call_operand.hbm [shape: bf16[128,128], index: 10, kind: input, shape index: {}]   ;;  %s3600_s11 = inlined_call_operand.hbm [shape: f32[1,128], index: 11, kind: input, shape index: {}]   ;;  %s3601_s12 = inlined_call_operand.hbm [shape: f32[24,32], index: 12, kind: input, shape index: {}]   ;;  %s3602_s13 = inlined_call_operand.hbm [shape: f32[24,32], index: 13, kind: input, shape index: {}]   ;;  %s3603_s14 = inlined_call_operand.vmem [shape: f32[24,32], index: 14, kind: input, shape index: {}]   ;;  %s3604_s15 = inlined_call_operand.hbm [shape: f32[24,32], index: 15, kind: input, shape index: {}]   ;;  %s3605_s16 = inlined_call_operand.vmem [shape: f32[24,1], index: 16, kind: output, shape index: {0}]   ;;  %s3606_s17 = inlined_call_operand.vmem [shape: f32[24,1], index: 17, kind: output, shape index: {1}]   ;;  %s3607_s18 = inlined_call_operand.hbm [shape: f32[1,1], index: 18, kind: output, shape index: {2}]  }
   0x1   :  { %3610 = sst [smem:[#allocation35_spill]] %s3589_s0 }
   0x2   :  { %3611 = sst [smem:[#allocation36_spill]] %s3590_s1 }
   0x3   :  { %3612 = sst [smem:[#allocation37_spill]] %s3591_s2 }
   0x4   :  { %24 = vsyncpa [#allocation3], 0 }
   0x5   :  { %25 = vsyncpa [#allocation6], 0 }
   0x6   :  { %26 = vsyncpa [#allocation9], 0 }
   0x7   :  { %27 = vsyncpa [#allocation12], 0 }
   0x8   :  { %28 = vsyncpa [#allocation15], 0 }
   0x9   :  { %29 = vsyncpa [#allocation18], 0 }
   0xa   :  { %30 = vsyncpa [#allocation21], 0 }
   0xb   :  { %31 = vsyncpa [#allocation24], 0 }
   0xc   :  { %32 = vsyncpa [#allocation4], 0  ;;  %s2982_s27 = smov [#allocation5]  }
   0xd   :  { %s50_s28 = sshll.u32 %s2982_s27, 4  ;;  %s51_s28 = int_to_ptr.vmem [resolvable:$true] %s50_s28 }
   0xe   :  { %s2672_s29 = scalar_lea.vmem %s51_s28, 512  ;;  %p2677_p1 = scmp.lt.s32.totalorder %s51_s28, %s51_s28 }
   0xf   :  { %p2673_p0 = scmp.ne.s32.totalorder %s51_s28, %s2672_s29  ;;  %p2678_p2 = scmp.lt.s32.totalorder %s2672_s29, %s2672_s29 }
  0x11   :  { %p2679_p3 = por %p2678_p2, %p2677_p1 }
  0x13   :  { %p2680_p4 = pnand %p2679_p3, %p2673_p0 }
  0x15   :  { %2683 = shalt.err (!%p2680_p4)
}
  0x16   :  { %s3608_s30 = smov 128   ;;  %s2984_s0 = smov 8  }
  0x17   :  { %s3613_s20 = sld [smem:[#allocation36_spill]]  ;;  %s2985_s21 = smov [#allocation8]  }
  0x18   :  { %s76_s22 = sshll.u32 %s2985_s21, 4  ;;  %s2986_s2 = smov [#allocation11]   ;;  %s77_s22 = int_to_ptr.vmem [resolvable:$true] %s76_s22 }
  0x19   :  { %s101_s23 = sshll.u32 %s2986_s2, 4  ;;  %s2692_s24 = scalar_lea.vmem %s77_s22, 1024  ;;  %s102_s23 = int_to_ptr.vmem [resolvable:$true] %s101_s23 }
  0x1a   :  { %p2693_p5 = scmp.ne.s32.totalorder %s77_s22, %s2692_s24  ;;  %p2697_p6 = scmp.lt.s32.totalorder %s77_s22, %s77_s22 }
  0x1b   :  { %p2698_p7 = scmp.lt.s32.totalorder %s2692_s24, %s2692_s24 }
  0x1d   :  { %56 = dma.hbm_to_vmem [thread:$0]  %s3613_s20, 512, %s51_s28, [#allocation6], %s3608_s30, %s3608_s30, %s2984_s0  }
  0x1e   :  { %p2699_p8 = por %p2698_p7, %p2697_p6 }
  0x20   :  { %p2700_p9 = pnand %p2699_p8, %p2693_p5 }
  0x22   :  { %2703 = shalt.err (!%p2700_p9)
}
  0x23   :  { %s2987_s25 = smov 64   ;;  %s2988_s26 = smov 4  }
  0x24   :  { %82 = dma.hbm_to_vmem [thread:$0]  %s3593_s4, 1024, %s77_s22, [#allocation9], %s2987_s25, %s2987_s25, %s2988_s26  }
  0x25   :  { %s2712_s28 = scalar_lea.vmem %s102_s23, 16  ;;  %s2716_s19 = scalar_lea.vmem %s102_s23, 32 }
  0x26   :  { %p2713_p10 = scmp.ne.s32.totalorder %s102_s23, %s2712_s28  ;;  %p2717_p11 = scmp.lt.s32.totalorder %s102_s23, %s102_s23 }
  0x27   :  { %p2718_p12 = scmp.lt.s32.totalorder %s2716_s19, %s2712_s28 }
  0x29   :  { %p2719_p13 = por %p2718_p12, %p2717_p11 }
  0x2b   :  { %p2720_p0 = pnand %p2719_p13, %p2713_p10 }
  0x2d   :  { %2723 = shalt.err (!%p2720_p0)
}
  0x2e   :  { %104 = dma.hbm_to_vmem [thread:$0]  %s3595_s6, 16, %s102_s23, [#allocation12]  }
  0x2f   :  { %s2989_s21 = smov [#allocation14]   ;;  %s2990_s24 = smov [#allocation17]  }
  0x30   :  { %s122_s2 = sshll.u32 %s2989_s21, 4  ;;  %s144_s30 = sshll.u32 %s2990_s24, 4  ;;  %s123_s2 = int_to_ptr.vmem [resolvable:$true] %s122_s2  ;;  %s145_s30 = int_to_ptr.vmem [resolvable:$true] %s144_s30 }
  0x31   :  { %s2732_s27 = scalar_lea.vmem %s123_s2, 1024  ;;  %p2737_p2 = scmp.lt.s32.totalorder %s123_s2, %s123_s2 }
  0x32   :  { %p2733_p1 = scmp.ne.s32.totalorder %s123_s2, %s2732_s27  ;;  %p2738_p3 = scmp.lt.s32.totalorder %s2732_s27, %s2732_s27 }
  0x34   :  { %p2739_p4 = por %p2738_p3, %p2737_p2 }
  0x36   :  { %p2740_p5 = pnand %p2739_p4, %p2733_p1 }
  0x38   :  { %2743 = shalt.err (!%p2740_p5)
}
  0x39   :  { %128 = dma.hbm_to_vmem [thread:$0]  %s3597_s8, 1024, %s123_s2, [#allocation15], %s2987_s25, %s2987_s25, %s2988_s26  }
  0x3a   :  { %s2752_s6 = scalar_lea.vmem %s145_s30, 1024  ;;  %p2757_p7 = scmp.lt.s32.totalorder %s145_s30, %s145_s30 }
  0x3b   :  { %p2753_p6 = scmp.ne.s32.totalorder %s145_s30, %s2752_s6  ;;  %p2758_p8 = scmp.lt.s32.totalorder %s2752_s6, %s2752_s6 }
  0x3d   :  { %p2759_p9 = por %p2758_p8, %p2757_p7 }
  0x3f   :  { %p2760_p10 = pnand %p2759_p9, %p2753_p6 }
  0x41   :  { %2763 = shalt.err (!%p2760_p10)
}
  0x42   :  { %150 = dma.hbm_to_vmem [thread:$0]  %s3599_s10, 1024, %s145_s30, [#allocation18], %s2987_s25, %s2987_s25, %s2988_s26  }
  0x43   :  { %s2991_s28 = smov [#allocation20]   ;;  %s2992_s1 = smov [#allocation2]  }
  0x44   :  { %s166_s19 = sshll.u32 %s2991_s28, 4  ;;  %s38_s8 = sshll.u32 %s2992_s1, 4  ;;  %s167_s19 = int_to_ptr.vmem [resolvable:$true] %s166_s19  ;;  %s39_s8 = int_to_ptr.vmem [resolvable:$true] %s38_s8 }
  0x45   :  { %s2772_s20 = scalar_lea.vmem %s167_s19, 384  ;;  %p2777_p12 = scmp.lt.s32.totalorder %s167_s19, %s167_s19 }
  0x46   :  { %p2773_p11 = scmp.ne.s32.totalorder %s167_s19, %s2772_s20  ;;  %p2778_p13 = scmp.lt.s32.totalorder %s2772_s20, %s2772_s20 }
  0x48   :  { %p2779_p0 = por %p2778_p13, %p2777_p12 }
  0x4a   :  { %p2780_p1 = pnand %p2779_p0, %p2773_p11 }
  0x4c   :  { %2783 = shalt.err (!%p2780_p1)
}
  0x4d   :  { %s3614_s21 = smov 128   ;;  %s2792_s10 = scalar_lea.vmem %s39_s8, 512 }
  0x4e   :  { %172 = dma.hbm_to_vmem [thread:$0]  %s3601_s12, 384, %s167_s19, [#allocation21], %s3614_s21, %s3614_s21, %s2984_s0  }
  0x4f   :  { %p2793_p2 = scmp.ne.s32.totalorder %s39_s8, %s2792_s10  ;;  %p2797_p3 = scmp.lt.s32.totalorder %s39_s8, %s39_s8 }
  0x50   :  { %p2798_p4 = scmp.lt.s32.totalorder %s2792_s10, %s2792_s10 }
  0x52   :  { %p2799_p5 = por %p2798_p4, %p2797_p3 }
  0x54   :  { %p2800_p6 = pnand %p2799_p5, %p2793_p2 }
  0x56   :  { %2803 = shalt.err (!%p2800_p6)
}
  0x57   :  { %s3615_s4 = sld [smem:[#allocation35_spill]]  ;;  %s2993_s22 = smov [#allocation7]  }
  0x58   :  { %s62_s6 = sshll.u32 %s2993_s22, 4  ;;  %s2994_s23 = smov [#allocation10]   ;;  %s63_s6 = int_to_ptr.vmem [resolvable:$true] %s62_s6 }
  0x59   :  { %s88_s12 = sshll.u32 %s2994_s23, 4  ;;  %s2812_s29 = scalar_lea.vmem %s63_s6, 1024  ;;  %s89_s12 = int_to_ptr.vmem [resolvable:$true] %s88_s12 }
  0x5a   :  { %p2813_p7 = scmp.ne.s32.totalorder %s63_s6, %s2812_s29  ;;  %p2817_p8 = scmp.lt.s32.totalorder %s63_s6, %s63_s6 }
  0x5b   :  { %p2818_p9 = scmp.lt.s32.totalorder %s2812_s29, %s2812_s29 }
  0x5d   :  { %44 = dma.hbm_to_vmem [thread:$0]  %s3615_s4, 512, %s39_s8, [#allocation3], %s3614_s21, %s3614_s21, %s2984_s0  }
  0x5e   :  { %p2819_p10 = por %p2818_p9, %p2817_p8 }
  0x60   :  { %p2820_p11 = pnand %p2819_p10, %p2813_p7 }
  0x62   :  { %2823 = shalt.err (!%p2820_p11)
}
  0x63   :  { %s3616_s1 = sld [smem:[#allocation37_spill]]  ;;  %s2832_s8 = scalar_lea.vmem %s89_s12, 1024 }
  0x64   :  { %p2833_p12 = scmp.ne.s32.totalorder %s89_s12, %s2832_s8  ;;  %p2837_p13 = scmp.lt.s32.totalorder %s89_s12, %s89_s12 }
  0x65   :  { %p2838_p0 = scmp.lt.s32.totalorder %s2832_s8, %s2832_s8 }
  0x67   :  { %p2839_p1 = por %p2838_p0, %p2837_p13 }
  0x69   :  { %68 = dma.hbm_to_vmem [thread:$0]  %s3616_s1, 1024, %s63_s6, [#allocation6], %s2987_s25, %s2987_s25, %s2988_s26  }
  0x6a   :  { %p2840_p2 = pnand %p2839_p1, %p2833_p12 }
  0x6c   :  { %2843 = shalt.err (!%p2840_p2)
}
  0x6d   :  { %94 = dma.hbm_to_vmem [thread:$0]  %s3594_s5, 1024, %s89_s12, [#allocation9], %s2987_s25, %s2987_s25, %s2988_s26  }
  0x6e   :  { %s2995_s24 = smov [#allocation13]   ;;  %s2996_s30 = smov [#allocation16]  }
  0x6f   :  { %s110_s10 = sshll.u32 %s2995_s24, 4  ;;  %s135_s27 = sshll.u32 %s2996_s30, 4  ;;  %s111_s10 = int_to_ptr.vmem [resolvable:$true] %s110_s10  ;;  %s136_s27 = int_to_ptr.vmem [resolvable:$true] %s135_s27 }
  0x70   :  { %s2852_s4 = scalar_lea.vmem %s111_s10, 1024  ;;  %p2857_p4 = scmp.lt.s32.totalorder %s111_s10, %s111_s10 }
  0x71   :  { %p2853_p3 = scmp.ne.s32.totalorder %s111_s10, %s2852_s4  ;;  %p2858_p5 = scmp.lt.s32.totalorder %s2852_s4, %s2852_s4 }
  0x73   :  { %p2859_p6 = por %p2858_p5, %p2857_p4 }
  0x75   :  { %p2860_p7 = pnand %p2859_p6, %p2853_p3 }
  0x77   :  { %2863 = shalt.err (!%p2860_p7)
}
  0x78   :  { %116 = dma.hbm_to_vmem [thread:$0]  %s3596_s7, 1024, %s111_s10, [#allocation12], %s2987_s25, %s2987_s25, %s2988_s26  }
  0x79   :  { %s2872_s5 = scalar_lea.vmem %s136_s27, 16  ;;  %s2876_s23 = scalar_lea.vmem %s136_s27, 32 }
  0x7a   :  { %p2873_p8 = scmp.ne.s32.totalorder %s136_s27, %s2872_s5  ;;  %p2877_p9 = scmp.lt.s32.totalorder %s136_s27, %s136_s27 }
  0x7b   :  { %p2878_p10 = scmp.lt.s32.totalorder %s2876_s23, %s2872_s5 }
  0x7d   :  { %p2879_p11 = por %p2878_p10, %p2877_p9 }
  0x7f   :  { %p2880_p12 = pnand %p2879_p11, %p2873_p8 }
  0x81   :  { %2883 = shalt.err (!%p2880_p12)
}
  0x82   :  { %138 = dma.hbm_to_vmem [thread:$0]  %s3598_s9, 16, %s136_s27, [#allocation15]  }
  0x83   :  { %s2997_s28 = smov [#allocation19]   ;;  %s2998_s1 = smov [#allocation22]  }
  0x84   :  { %s157_s19 = sshll.u32 %s2997_s28, 4  ;;  %s178_s8 = sshll.u32 %s2998_s1, 4  ;;  %s158_s19 = int_to_ptr.vmem [resolvable:$true] %s157_s19  ;;  %s179_s8 = int_to_ptr.vmem [resolvable:$true] %s178_s8 }
  0x85   :  { %s2892_s20 = scalar_lea.vmem %s158_s19, 16  ;;  %s2896_s7 = scalar_lea.vmem %s158_s19, 32 }
  0x86   :  { %p2893_p13 = scmp.ne.s32.totalorder %s158_s19, %s2892_s20  ;;  %p2897_p0 = scmp.lt.s32.totalorder %s158_s19, %s158_s19 }
  0x87   :  { %p2898_p1 = scmp.lt.s32.totalorder %s2896_s7, %s2892_s20 }
  0x89   :  { %p2899_p2 = por %p2898_p1, %p2897_p0 }
  0x8b   :  { %p2900_p3 = pnand %p2899_p2, %p2893_p13 }
  0x8d   :  { %2903 = shalt.err (!%p2900_p3)
}
  0x8e   :  { %160 = dma.hbm_to_vmem [thread:$0]  %s3600_s11, 16, %s158_s19, [#allocation18]  }
  0x8f   :  { %s2912_s2 = scalar_lea.vmem %s179_s8, 384  ;;  %p2917_p5 = scmp.lt.s32.totalorder %s179_s8, %s179_s8 }
  0x90   :  { %p2913_p4 = scmp.ne.s32.totalorder %s179_s8, %s2912_s2  ;;  %p2918_p6 = scmp.lt.s32.totalorder %s2912_s2, %s2912_s2 }
  0x92   :  { %p2919_p7 = por %p2918_p6, %p2917_p5 }
  0x94   :  { %p2920_p8 = pnand %p2919_p7, %p2913_p4 }
  0x96   :  { %2923 = shalt.err (!%p2920_p8)
}
  0x97   :  { %184 = dma.hbm_to_vmem [thread:$0]  %s3602_s13, 384, %s179_s8, [#allocation21], %s3614_s21, %s3614_s21, %s2984_s0  }
  0x98   :  { %s2999_s10 = smov [#allocation23]  }
  0x99   :  { %s192_s30 = sshll.u32 %s2999_s10, 4  ;;  %s193_s30 = int_to_ptr.vmem [resolvable:$true] %s192_s30 }
  0x9a   :  { %s2932_s27 = scalar_lea.vmem %s193_s30, 384  ;;  %p2937_p10 = scmp.lt.s32.totalorder %s193_s30, %s193_s30 }
  0x9b   :  { %p2933_p9 = scmp.ne.s32.totalorder %s193_s30, %s2932_s27  ;;  %p2938_p11 = scmp.lt.s32.totalorder %s2932_s27, %s2932_s27 }
  0x9d   :  { %p2939_p12 = por %p2938_p11, %p2937_p10 }
  0x9f   :  { %p2940_p13 = pnand %p2939_p12, %p2933_p9 }
  0xa1   :  { %2943 = shalt.err (!%p2940_p13)
}
  0xa2   :  { %198 = dma.hbm_to_vmem [thread:$0]  %s3604_s15, 384, %s193_s30, [#allocation24], %s3614_s21, %s3614_s21, %s2984_s0  }
  0xa3   :  { %2964 = dma.done.wait [#allocation3], 512  }
  0xa4   :  { %2965 = vsyncadd [#allocation3], 4294966784 }
  0xa5   :  { %2966 = dma.done.wait [#allocation6], 1536  }
  0xa6   :  { %2967 = vsyncadd [#allocation6], 4294965760 }
  0xa7   :  { %2968 = dma.done.wait [#allocation9], 2048  }
  0xa8   :  { %2969 = vsyncadd [#allocation9], 4294965248 }
  0xa9   :  { %2970 = dma.done.wait [#allocation12], 1040  }
  0xaa   :  { %2971 = vsyncadd [#allocation12], 4294966256 }
  0xab   :  { %2972 = dma.done.wait [#allocation15], 1040  }
  0xac   :  { %2973 = vsyncadd [#allocation15], 4294966256 }
  0xad   :  { %2974 = dma.done.wait [#allocation18], 1040  }
  0xae   :  { %2975 = vsyncadd [#allocation18], 4294966256 }
  0xaf   :  { %2976 = dma.done.wait [#allocation21], 768  }
  0xb0   :  { %2977 = vsyncadd [#allocation21], 4294966528 }
  0xb1   :  { %2978 = dma.done.wait [#allocation24], 384  }
  0xb2   :  { %2979 = vsyncadd [#allocation24], 4294966912  ;;  %v250_v0 = vlaneseq  ;;  %vm329_vm2 = vcmask 261120   ;;  %v3176_v6 = vld [vmem:[#allocation2 + $0x10] sm:$0xff]  ;;  %v3178_v7 = vld [vmem:[#allocation2 + $0x18] sm:$0xff]  ;;  %vm3001_vm5 = vmmov 0  }
  0xb3   :  { %v3180_v8 = vld [vmem:[#allocation2] sm:$0xff]  ;;  %v3185_v12 = vld [vmem:[#allocation2 + $0x8] sm:$0xff]  ;;  %v3198_v29 = vld [vmem:[#allocation5 + $0x10] sm:$0xff] }
  0xb4   :  { %v251_v1 = vshrl.u32 %v250_v0, 7  ;;  %v256_v2 = vand.u32 127, %v250_v0  ;;  %v3194_v27 = vld [vmem:[#allocation5] sm:$0xff]  ;;  %v3200_v30 = vld [vmem:[#allocation5 + $0x18] sm:$0xff]  ;;  %v3202_v31 = vld [vmem:[#allocation5 + $0x8] sm:$0xff] }
  0xb5   :  { %v2524_v50 = vld [vmem:[#allocation8 + $0x38] sm:$0xff]   ;;  %v2526_v52 = vld [vmem:[#allocation8 + $0x30] sm:$0xff]   ;;  %v2528_v54 = vld [vmem:[#allocation8 + $0x28] sm:$0xff]  }
  0xb6   :  { %v3173_v3 = vadd.s32 16, %v251_v1  ;;  %v254_v4 = vadd.s32 24, %v251_v1  ;;  %v252_v5 = vadd.s32 8, %v251_v1  ;;  %vm257_vm0 = vcmp.eq.s32.totalorder %v251_v1, %v256_v2  ;;  %v2525_v51 = vld [vmem:[#allocation7 + $0x38] sm:$0xff]   ;;  %v2527_v53 = vld [vmem:[#allocation7 + $0x30] sm:$0xff]   ;;  %v2529_v55 = vld [vmem:[#allocation7 + $0x28] sm:$0xff]  }
  0xb7   :  { %v261_v11 = vsel %vm257_vm0, 1.0, %v3180_v8  ;;  %2283 = vmatprep.subr.bf16.mxu1 %v2525_v51  ;;  %v2530_v56 = vld [vmem:[#allocation8 + $0x20] sm:$0xff]   ;;  %v2532_v58 = vld [vmem:[#allocation8 + $0x18] sm:$0xff]   ;;  %v2534_v60 = vld [vmem:[#allocation8 + $0x10] sm:$0xff]   ;;  %v618_v1 = vpack.c.bf16 %v3200_v30, %v3198_v29 }
  0xb8   :  { %vm259_vm1 = vcmp.eq.s32.totalorder %v3173_v3, %v256_v2  ;;  %vm260_vm3 = vcmp.eq.s32.totalorder %v254_v4, %v256_v2  ;;  %vm258_vm4 = vcmp.eq.s32.totalorder %v252_v5, %v256_v2  ;;  %v330_v14 = vsel %vm329_vm2, %v261_v11, 0.0  ;;  %2284 = vmatpush3.bf16.msra.mxu1 %v2525_v51  ;;  %v2531_v57 = vld [vmem:[#allocation7 + $0x20] sm:$0xff]   ;;  %v2533_v59 = vld [vmem:[#allocation7 + $0x18] sm:$0xff]   ;;  %v2535_v61 = vld [vmem:[#allocation7 + $0x10] sm:$0xff]  }
  0xb9   :  { %v263_v9 = vsel %vm259_vm1, 1.0, %v3176_v6  ;;  %v264_v10 = vsel %vm260_vm3, 1.0, %v3178_v7  ;;  %v262_v15 = vsel %vm258_vm4, 1.0, %v3185_v12  ;;  %331 = vadd.xlane.f32.xlu1 %v330_v14  ;;  %2285 = vmatprep.subr.bf16.mxu1 %v2527_v53  ;;  %v2536_v62 = vld [vmem:[#allocation8 + $0x8] sm:$0xff]   ;;  %v2538_v0 = vld [vmem:[#allocation8] sm:$0xff]   ;;  %v617_v4 = vpack.c.bf16 %v3202_v31, %v3194_v27 }
  0xba   :  { %v336_v13 = vsel %vm329_vm2, %v263_v9, 0.0  ;;  %v339_v16 = vsel %vm329_vm2, %v264_v10, 0.0  ;;  %v333_v17 = vsel %vm329_vm2, %v262_v15, 0.0  ;;  %v2537_v63 = vld [vmem:[#allocation7 + $0x8] sm:$0xff]   ;;  %v2539_v2 = vld [vmem:[#allocation7] sm:$0xff]  }
  0xbb   :  { %337 = vadd.xlane.f32.xlu0 %v336_v13 }
  0xbc   :  { %2286 = vmatpush3.bf16.msra.mxu1 %v2527_v53 }
  0xbd   :  { %334 = vadd.xlane.f32.xlu1 %v333_v17  ;;  %2287 = vmatprep.subr.bf16.mxu1 %v2529_v55  ;;  %v2542_v17 = vld [vmem:[#allocation10 + $0x28] sm:$0xff]  }
  0xbf   :  { %340 = vadd.xlane.f32.xlu0 %v339_v16  ;;  %v2541_v16 = vld [vmem:[#allocation10 + $0x30] sm:$0xff]  }
  0xc0   :  { %2288 = vmatpush3.bf16.msra.mxu1 %v2529_v55 }
  0xc1   :  { %2289 = vmatprep.subr.bf16.mxu1 %v2531_v57 }
  0xc4   :  { %2290 = vmatpush3.bf16.msra.mxu1 %v2531_v57 }
  0xc5   :  { %2291 = vmatprep.subr.bf16.mxu1 %v2533_v59 }
  0xc8   :  { %2292 = vmatpush3.bf16.msra.mxu1 %v2533_v59 }
  0xc9   :  { %2293 = vmatprep.subr.bf16.mxu1 %v2535_v61 }
  0xcc   :  { %2294 = vmatpush3.bf16.msra.mxu1 %v2535_v61 }
  0xcd   :  { %2295 = vmatprep.subr.bf16.mxu1 %v2537_v63 }
  0xd0   :  { %2296 = vmatpush3.bf16.msra.mxu1 %v2537_v63 }
  0xd1   :  { %2297 = vmatprep.subr.bf16.mxu1 %v2539_v2 }
  0xd4   :  { %2298 = vmatpush3.bf16.msra.mxu1 %v2539_v2 }
  0xec   :  { %265 = vxpose.xlu0.b32.start [1/4] (short) (narrow) %v261_v11, 32 }
  0xf0   :  { %266 = vxpose.xlu0.b32.cont [2/4] (short) (narrow) %v262_v15, 32  ;;  %v2540_v15 = vld [vmem:[#allocation10 + $0x38] sm:$0xff]  }
  0xf4   :  { %267 = vxpose.xlu0.b32.cont [3/4] (short) (narrow) %v263_v9, 32 }
  0xf8   :  { %268 = vxpose.xlu0.b32.end [4/4] (short) (narrow) %v264_v10, 32 }
 0x142   :  { %v332_v19 = vpop.xlane.xlu1 %331 }
 0x143   :  { %v342_v21 = vmax.f32 %v332_v19, 1.0  ;;  %v2544_v19 = vld [vmem:[#allocation10 + $0x18] sm:$0xff]  }
 0x144   :  { %v338_v18 = vpop.xlane.xlu0 %337 }
 0x145   :  { %v344_v20 = vmax.f32 %v338_v18, 1.0  ;;  %2572 = vrsqrt.f32 %v342_v21  ;;  %v2543_v18 = vld [vmem:[#allocation10 + $0x20] sm:$0xff]  }
 0x146   :  { %v335_v23 = vpop.xlane.xlu1 %334 }
 0x147   :  { %2574 = vrsqrt.f32 %v344_v20  ;;  %v343_v25 = vmax.f32 %v335_v23, 1.0  ;;  %v2545_v20 = vld [vmem:[#allocation10 + $0x10] sm:$0xff]  }
 0x148   :  { %v341_v22 = vpop.xlane.xlu0 %340 }
 0x149   :  { %v345_v24 = vmax.f32 %v341_v22, 1.0 }
 0x14b   :  { %2576 = vrsqrt.f32 %v345_v24 }
 0x14c   :  { %2578 = vrsqrt.f32 %v343_v25 }
 0x152   :  { %v3192_v26 = vpop.eup %2572 }
 0x153   :  { %v447_v33 = vmul.f32 %v3192_v26, %v3194_v27 }
 0x154   :  { %v3196_v28 = vpop.eup %2574 }
 0x155   :  { %v449_v35 = vmul.f32 %v3196_v28, %v3198_v29 }
 0x158   :  { %v3204_v32 = vpop.eup %2576 }
 0x159   :  { %v3208_v34 = vpop.eup %2578  ;;  %v450_v36 = vmul.f32 %v3204_v32, %v3200_v30 }
 0x15a   :  { %v448_v37 = vmul.f32 %v3208_v34, %v3202_v31 }
 0x15b   :  { %v452_v38 = vpack.c.bf16 %v450_v36, %v449_v35 }
 0x15c   :  { %v451_v39 = vpack.c.bf16 %v448_v37, %v447_v33  ;;  %v2101_v33 = vld [vmem:[%s3592_s3] ss:$0 sm:$0xff] }
 0x15d   :  { %2275 = vmatprep.subr.bf16.mxu0 %v452_v38 }
 0x15e   :  { %2276 = vmatpush3.bf16.msra.mxu0 %v452_v38 }
 0x15f   :  { %2277 = vmatprep.subr.bf16.mxu0 %v451_v39 }
 0x162   :  { %2278 = vmatpush3.bf16.msra.mxu0 %v451_v39 }
 0x163   :  { %2303 = vmatprep.subr.bf16.mxu0 %v2524_v50 }
 0x168   :  { %v281_v40 = vpop.trf.xlu0 }
 0x169   :  { %v346_v41 = vsel %vm329_vm2, %v281_v40, 0.0 }
 0x16a   :  { %347 = vadd.xlane.f32.xlu1 %v346_v41 }
 0x16c   :  { %v282_v42 = vpop.trf.xlu0 }
 0x16d   :  { %v3217_v43 = vpack.c.bf16 %v282_v42, %v281_v40  ;;  %v349_v49 = vsel %vm329_vm2, %v282_v42, 0.0 }
 0x16f   :  { %2279 = vmatprep.mubr.msk.bf16.mxu0 %vm329_vm2, %v3217_v43 }
 0x170   :  { %v283_v44 = vpop.trf.xlu0 }
 0x171   :  { %v352_v45 = vsel %vm329_vm2, %v283_v44, 0.0 }
 0x172   :  { %353 = vadd.xlane.f32.xlu1 %v352_v45 }
 0x174   :  { %v284_v46 = vpop.trf.xlu0 }
 0x175   :  { %v3222_v47 = vpack.c.bf16 %v284_v46, %v283_v44  ;;  %v355_v48 = vsel %vm329_vm2, %v284_v46, 0.0 }
 0x176   :  { %356 = vadd.xlane.f32.xlu1 %v355_v48 }
 0x177   :  { %2280 = vmatmul.mubr.msk.bf16.vlgmr.msra.gmra.mxu0 %vm329_vm2, %v3222_v47 }
 0x178   :  { %2304 = vmatpush3.bf16.msra.mxu0 %v2524_v50  ;;  %2319 = vmatprep.mubr.bf16.mxu0 %v617_v4 }
 0x179   :  { %2305 = vmatprep.subr.bf16.mxu0 %v2526_v52 }
 0x17a   :  { %350 = vadd.xlane.f32.xlu1 %v349_v49 }
 0x17c   :  { %2306 = vmatpush3.bf16.msra.mxu0 %v2526_v52 }
 0x17d   :  { %2307 = vmatprep.subr.bf16.mxu0 %v2528_v54 }
 0x180   :  { %2308 = vmatpush3.bf16.msra.mxu0 %v2528_v54 }
 0x181   :  { %2309 = vmatprep.subr.bf16.mxu0 %v2530_v56 }
 0x184   :  { %2310 = vmatpush3.bf16.msra.mxu0 %v2530_v56 }
 0x185   :  { %2311 = vmatprep.subr.bf16.mxu0 %v2532_v58 }
 0x188   :  { %2312 = vmatpush3.bf16.msra.mxu0 %v2532_v58 }
 0x189   :  { %2313 = vmatprep.subr.bf16.mxu0 %v2534_v60 }
 0x18c   :  { %2314 = vmatpush3.bf16.msra.mxu0 %v2534_v60 }
 0x18d   :  { %2315 = vmatprep.subr.bf16.mxu0 %v2536_v62 }
 0x190   :  { %2316 = vmatpush3.bf16.msra.mxu0 %v2536_v62 }
 0x191   :  { %2317 = vmatprep.subr.bf16.mxu0 %v2538_v0 }
 0x194   :  { %2318 = vmatpush3.bf16.msra.mxu0 %v2538_v0 }
 0x195   :  { %2331 = vmatprep.subr.bf16.mxu0 %v2540_v15 }
 0x197   :  { %2320 = vmatmul.mubr.bf16.vlgmr.msra.gmra.mxu0 %v618_v1 }
 0x198   :  { %2332 = vmatpush3.bf16.msra.mxu0 %v2540_v15 }
 0x199   :  { %2333 = vmatprep.subr.bf16.mxu0 %v2541_v16 }
 0x19c   :  { %2334 = vmatpush3.bf16.msra.mxu0 %v2541_v16 }
 0x19d   :  { %2335 = vmatprep.subr.bf16.mxu0 %v2542_v17 }
 0x1a0   :  { %2336 = vmatpush3.bf16.msra.mxu0 %v2542_v17  ;;  %v2552_v17 = vld [vmem:[#allocation13 + $0x18] sm:$0xff]  }
 0x1a1   :  { %2337 = vmatprep.subr.bf16.mxu0 %v2543_v18 }
 0x1a4   :  { %2338 = vmatpush3.bf16.msra.mxu0 %v2543_v18  ;;  %v2553_v18 = vld [vmem:[#allocation13 + $0x10] sm:$0xff]  }
 0x1a5   :  { %2339 = vmatprep.subr.bf16.mxu0 %v2544_v19 }
 0x1a8   :  { %2340 = vmatpush3.bf16.msra.mxu0 %v2544_v19  ;;  %v2554_v19 = vld [vmem:[#allocation13 + $0x8] sm:$0xff]  }
 0x1a9   :  { %2341 = vmatprep.subr.bf16.mxu0 %v2545_v20 }
 0x1ac   :  { %2342 = vmatpush3.bf16.msra.mxu0 %v2545_v20  ;;  %v376_v20 = vsel %vm329_vm2, %v3176_v6, 0.0 }
 0x1ad   :  { %377 = vadd.xlane.f32.xlu1 %v376_v20 }
 0x1f3   :  { %v348_v21 = vpop.xlane.xlu1 %347 }
 0x1f4   :  { %v358_v25 = vmax.f32 %v348_v21, 1.0  ;;  %v2555_v21 = vld [vmem:[#allocation13] sm:$0xff]  }
 0x1fb   :  { %v354_v22 = vpop.xlane.xlu1 %353 }
 0x1fc   :  { %v360_v24 = vmax.f32 %v354_v22, 1.0  ;;  %v379_v22 = vsel %vm329_vm2, %v3178_v7, 0.0 }
 0x1fd   :  { %380 = vadd.xlane.f32.xlu1 %v379_v22 }
 0x1fe   :  { %2580 = vrsqrt.f32 %v360_v24  ;;  %v373_v24 = vsel %vm329_vm2, %v3185_v12, 0.0 }
 0x1ff   :  { %v357_v23 = vpop.xlane.xlu1 %356  ;;  %2582 = vrsqrt.f32 %v358_v25  ;;  %v2120_v25 = vld [vmem:[#allocation11] ss:$0 sm:$0xff] }
 0x200   :  { %v361_v29 = vmax.f32 %v357_v23, 1.0  ;;  %v370_v23 = vsel %vm329_vm2, %v3180_v8, 0.0 }
 0x201   :  { %371 = vadd.xlane.f32.xlu1 %v370_v23  ;;  %v2562_v23 = vld [vmem:[#allocation14 + $0x8] sm:$0xff]  }
 0x202   :  { %2584 = vrsqrt.f32 %v361_v29 }
 0x203   :  { %v351_v27 = vpop.xlane.xlu1 %350 }
 0x204   :  { %v359_v30 = vmax.f32 %v351_v27, 1.0 }
 0x205   :  { %374 = vadd.xlane.f32.xlu1 %v373_v24  ;;  %v2563_v24 = vld [vmem:[#allocation14] sm:$0xff]  }
 0x206   :  { %2586 = vrsqrt.f32 %v359_v30 }
 0x20b   :  { %v3237_v37 = vpop.eup %2580 }
 0x20c   :  { %v3240_v42 = vpop.eup %2582 }
 0x20f   :  { %v3245_v48 = vpop.eup %2584 }
 0x213   :  { %v3250_v54 = vpop.eup %2586 }
 0x237   :  { %v2281_v5 = vpop.f32.mrf.mxu0 }
 0x238   :  { %297 = vxpose.xlu1.b32.start [1/4] (short) (narrow) %v3180_v8, 32 }
 0x239   :  { %v493_v9 = vpop.f32.mrf.mxu0 }
 0x23b   :  { %v2282_v10 = vpop.f32.mrf.mxu0 }
 0x23c   :  { %v509_v14 = vpack.c.bf16 %v2282_v10, %v2281_v5  ;;  %v2551_v10 = vld [vmem:[#allocation13 + $0x20] sm:$0xff]   ;;  %298 = vxpose.xlu1.b32.cont [2/4] (short) (narrow) %v3185_v12, 32 }
 0x23d   :  { %v496_v11 = vpop.f32.mrf.mxu0 }
 0x23e   :  { %v508_v13 = vpack.c.bf16 %v496_v11, %v493_v9  ;;  %v2548_v9 = vld [vmem:[#allocation13 + $0x38] sm:$0xff]  }
 0x240   :  { %2299 = vmatprep.mubr.bf16.mxu1 %v508_v13  ;;  %299 = vxpose.xlu1.b32.cont [3/4] (short) (narrow) %v3176_v6, 32 }
 0x241   :  { %2300 = vmatmul.mubr.bf16.vlgmr.msra.gmra.mxu1 %v509_v14 }
 0x242   :  { %2327 = vmatprep.mubr.msk.bf16.mxu1 %vm329_vm2, %v3217_v43 }
 0x244   :  { %300 = vxpose.xlu1.b32.end [4/4] (short) (narrow) %v3178_v7, 32 }
 0x257   :  { %v2321_v31 = vpop.f32.mrf.mxu0 }
 0x259   :  { %v701_v38 = vpop.f32.mrf.mxu0 }
 0x25b   :  { %v2322_v49 = vpop.f32.mrf.mxu0 }
 0x25d   :  { %v704_v58 = vpop.f32.mrf.mxu0 }
 0x301   :  { %v2301_v35 = vpop.f32.mrf.mxu1 }
 0x302   :  { %v607_v36 = vadd.f32 %v2301_v35, %v2101_v33 }
 0x303   :  { %v598_v39 = vpop.f32.mrf.mxu1 }
 0x304   :  { %v615_v40 = vmul.f32 %v3237_v37, %v607_v36  ;;  %v599_v41 = vadd.f32 %v2101_v33, %v598_v39 }
 0x305   :  { %v2302_v43 = vpop.f32.mrf.mxu1 }
 0x306   :  { %v3242_v44 = vadd.f32 %v2321_v31, %v615_v40  ;;  %v613_v45 = vmul.f32 %v3240_v42, %v599_v41  ;;  %v610_v46 = vadd.f32 %v2302_v43, %v2101_v33 }
 0x307   :  { %v601_v50 = vpop.f32.mrf.mxu1 }
 0x308   :  { %v3247_v51 = vadd.f32 %v701_v38, %v613_v45  ;;  %v616_v52 = vmul.f32 %v3245_v48, %v610_v46  ;;  %v602_v53 = vadd.f32 %v2101_v33, %v601_v50  ;;  %v722_v55 = vmax.f32 %v3242_v44, 0.0  ;;  %v378_v50 = vpop.xlane.xlu1 %377 }
 0x30a   :  { %v3253_v56 = vadd.f32 %v2322_v49, %v616_v52  ;;  %v614_v57 = vmul.f32 %v3250_v54, %v602_v53  ;;  %v720_v59 = vmax.f32 %v3247_v51, 0.0  ;;  %v743_v63 = vmul.f32 %v3196_v28, %v722_v55  ;;  %v2546_v28 = vld [vmem:[#allocation10 + $0x8] sm:$0xff]  }
 0x30b   :  { %2343 = vmatprep.subr.bf16.mxu0 %v2546_v28 }
 0x30c   :  { %v723_v60 = vmax.f32 %v3253_v56, 0.0  ;;  %v3258_v61 = vadd.f32 %v704_v58, %v614_v57  ;;  %v741_v2 = vmul.f32 %v3192_v26, %v720_v59  ;;  %2344 = vmatpush3.bf16.msra.mxu0 %v2546_v28  ;;  %v2549_v26 = vld [vmem:[#allocation13 + $0x30] sm:$0xff]   ;;  %v381_v51 = vpop.xlane.xlu1 %380 }
 0x30d   :  { %v385_v28 = vmax.f32 %v381_v51, 1.0 }
 0x30e   :  { %v721_v62 = vmax.f32 %v3258_v61, 0.0  ;;  %v744_v0 = vmul.f32 %v3204_v32, %v723_v60  ;;  %v2547_v32 = vld [vmem:[#allocation10] sm:$0xff]  }
 0x30f   :  { %2345 = vmatprep.subr.bf16.mxu0 %v2547_v32 }
 0x310   :  { %v746_v1 = vpack.c.bf16 %v744_v0, %v743_v63  ;;  %v742_v4 = vmul.f32 %v3208_v34, %v721_v62  ;;  %2346 = vmatpush3.bf16.msra.mxu0 %v2547_v32  ;;  %v2550_v34 = vld [vmem:[#allocation13 + $0x28] sm:$0xff]   ;;  %v372_v52 = vpop.xlane.xlu1 %371  ;;  %v2557_v63 = vld [vmem:[#allocation14 + $0x30] sm:$0xff]  }
 0x311   :  { %v2558_v0 = vld [vmem:[#allocation14 + $0x28] sm:$0xff]   ;;  %v382_v32 = vmax.f32 %v372_v52, 1.0 }
 0x312   :  { %2323 = vmatprep.subr.bf16.mxu1 %v746_v1  ;;  %v745_v5 = vpack.c.bf16 %v742_v4, %v741_v2  ;;  %v2560_v2 = vld [vmem:[#allocation14 + $0x18] sm:$0xff]   ;;  %v2561_v4 = vld [vmem:[#allocation14 + $0x10] sm:$0xff]  }
 0x313   :  { %2324 = vmatpush3.bf16.msra.mxu1 %v746_v1  ;;  %v2559_v1 = vld [vmem:[#allocation14 + $0x20] sm:$0xff]  }
 0x314   :  { %2325 = vmatprep.subr.bf16.mxu1 %v745_v5  ;;  %v375_v53 = vpop.xlane.xlu1 %374 }
 0x317   :  { %2326 = vmatpush3.bf16.msra.mxu1 %v745_v5  ;;  %v384_v5 = vmax.f32 %v378_v50, 1.0 }
 0x318   :  { %2351 = vmatprep.subr.bf16.mxu1 %v2548_v9  ;;  %v313_v56 = vpop.trf.xlu1 }
 0x319   :  { %v386_v58 = vsel %vm329_vm2, %v313_v56, 0.0  ;;  %2588 = vrsqrt.f32 %v384_v5 }
 0x31a   :  { %2328 = vmatmul.mubr.msk.bf16.vlgmr.msra.gmra.mxu1 %vm329_vm2, %v3222_v47  ;;  %2590 = vrsqrt.f32 %v385_v28 }
 0x31b   :  { %2352 = vmatpush3.bf16.msra.mxu1 %v2548_v9  ;;  %v383_v9 = vmax.f32 %v375_v53, 1.0  ;;  %2592 = vrsqrt.f32 %v382_v32 }
 0x31c   :  { %2353 = vmatprep.subr.bf16.mxu1 %v2549_v26 }
 0x31d   :  { %2594 = vrsqrt.f32 %v383_v9  ;;  %v2564_v9 = vld [vmem:[#allocation17 + $0x38] sm:$0xff]  }
 0x31f   :  { %2354 = vmatpush3.bf16.msra.mxu1 %v2549_v26 }
 0x320   :  { %2355 = vmatprep.subr.bf16.mxu1 %v2550_v34 }
 0x323   :  { %2356 = vmatpush3.bf16.msra.mxu1 %v2550_v34 }
 0x324   :  { %2357 = vmatprep.subr.bf16.mxu1 %v2551_v10 }
 0x327   :  { %2358 = vmatpush3.bf16.msra.mxu1 %v2551_v10  ;;  %v3304_v10 = vpop.eup %2588 }
 0x328   :  { %2359 = vmatprep.subr.bf16.mxu1 %v2552_v17 }
 0x32b   :  { %2360 = vmatpush3.bf16.msra.mxu1 %v2552_v17 }
 0x32c   :  { %2361 = vmatprep.subr.bf16.mxu1 %v2553_v18 }
 0x32f   :  { %2362 = vmatpush3.bf16.msra.mxu1 %v2553_v18 }
 0x330   :  { %2363 = vmatprep.subr.bf16.mxu1 %v2554_v19 }
 0x333   :  { %2364 = vmatpush3.bf16.msra.mxu1 %v2554_v19 }
 0x334   :  { %2365 = vmatprep.subr.bf16.mxu1 %v2555_v21 }
 0x337   :  { %2366 = vmatpush3.bf16.msra.mxu1 %v2555_v21 }
 0x3da   :  { %v2329_v11 = vpop.f32.mrf.mxu1 }
 0x3dc   :  { %v781_v47 = vpop.f32.mrf.mxu1 }
 0x3de   :  { %v2330_v13 = vpop.f32.mrf.mxu1 }
 0x3df   :  { %v797_v16 = vpack.c.bf16 %v2330_v13, %v2329_v11  ;;  %v3306_v11 = vpop.eup %2590 }
 0x3e0   :  { %v784_v14 = vpop.f32.mrf.mxu1  ;;  %v3308_v13 = vpop.eup %2592 }
 0x3e1   :  { %v796_v15 = vpack.c.bf16 %v784_v14, %v781_v47 }
 0x3e3   :  { %2347 = vmatprep.mubr.bf16.mxu0 %v796_v15 }
 0x3e4   :  { %2348 = vmatmul.mubr.bf16.vlgmr.msra.gmra.mxu0 %v797_v16  ;;  %v3312_v16 = vpop.eup %2594 }
 0x4a4   :  { %v2349_v27 = vpop.f32.mrf.mxu0 }
 0x4a5   :  { %v895_v29 = vadd.f32 %v2349_v27, %v2120_v25 }
 0x4a6   :  { %v886_v30 = vpop.f32.mrf.mxu0 }
 0x4a7   :  { %v887_v31 = vadd.f32 %v2120_v25, %v886_v30  ;;  %v903_v38 = vmul.f32 %v3237_v37, %v895_v29 }
 0x4a8   :  { %v2350_v33 = vpop.f32.mrf.mxu0 }
 0x4a9   :  { %v901_v35 = vmul.f32 %v3240_v42, %v887_v31  ;;  %v898_v36 = vadd.f32 %v2350_v33, %v2120_v25  ;;  %v907_v41 = vadd.f32 %v903_v38, %v722_v55 }
 0x4aa   :  { %v889_v39 = vpop.f32.mrf.mxu0 }
 0x4ab   :  { %v904_v8 = vmul.f32 %v3245_v48, %v898_v36  ;;  %v890_v40 = vadd.f32 %v2120_v25, %v889_v39  ;;  %v905_v6 = vadd.f32 %v901_v35, %v720_v59  ;;  %v911_v46 = vmax.f32 %v907_v41, 0.0 }
 0x4ad   :  { %v908_v7 = vadd.f32 %v904_v8, %v723_v60  ;;  %v902_v12 = vmul.f32 %v3250_v54, %v890_v40  ;;  %v909_v37 = vmax.f32 %v905_v6, 0.0  ;;  %v314_v54 = vpop.trf.xlu1 }
 0x4ae   :  { %v412_v57 = vpack.c.bf16 %v314_v54, %v313_v56  ;;  %v389_v59 = vsel %vm329_vm2, %v314_v54, 0.0 }
 0x4af   :  { %v906_v42 = vadd.f32 %v902_v12, %v721_v62  ;;  %v912_v43 = vmax.f32 %v908_v7, 0.0  ;;  %v2556_v62 = vld [vmem:[#allocation14 + $0x38] sm:$0xff]   ;;  %v2139_v12 = vld [vmem:[#allocation16] ss:$0 sm:$0xff] }
 0x4b0   :  { %2375 = vmatprep.mubr.msk.bf16.mxu0 %vm329_vm2, %v412_v57  ;;  %2379 = vmatprep.subr.bf16.mxu1 %v2556_v62 }
 0x4b1   :  { %v910_v45 = vmax.f32 %v906_v42, 0.0  ;;  %v914_v49 = vpack.c.bf16 %v912_v43, %v911_v46  ;;  %v315_v44 = vpop.trf.xlu1 }
 0x4b2   :  { %v392_v55 = vsel %vm329_vm2, %v315_v44, 0.0 }
 0x4b3   :  { %v913_v48 = vpack.c.bf16 %v910_v45, %v909_v37  ;;  %393 = vadd.xlane.f32.xlu0 %v392_v55 }
 0x4b5   :  { %2367 = vmatprep.mubr.bf16.mxu1 %v913_v48  ;;  %v316_v60 = vpop.trf.xlu1 }
 0x4b6   :  { %2368 = vmatmul.mubr.bf16.vlgmr.msra.gmra.mxu1 %v914_v49  ;;  %v395_v61 = vsel %vm329_vm2, %v316_v60, 0.0  ;;  %v3316_v22 = vpack.c.bf16 %v316_v60, %v315_v44 }
 0x4b7   :  { %387 = vadd.xlane.f32.xlu0 %v386_v58  ;;  %396 = vadd.xlane.f32.xlu1 %v395_v61 }
 0x4b8   :  { %2380 = vmatpush3.bf16.msra.mxu1 %v2556_v62 }
 0x4b9   :  { %2381 = vmatprep.subr.bf16.mxu1 %v2557_v63 }
 0x4bb   :  { %390 = vadd.xlane.f32.xlu0 %v389_v59 }
 0x4bc   :  { %2382 = vmatpush3.bf16.msra.mxu1 %v2557_v63 }
 0x4bd   :  { %2383 = vmatprep.subr.bf16.mxu1 %v2558_v0 }
 0x4c0   :  { %2384 = vmatpush3.bf16.msra.mxu1 %v2558_v0 }
 0x4c1   :  { %2385 = vmatprep.subr.bf16.mxu1 %v2559_v1 }
 0x4c4   :  { %2386 = vmatpush3.bf16.msra.mxu1 %v2559_v1 }
 0x4c5   :  { %2387 = vmatprep.subr.bf16.mxu1 %v2560_v2 }
 0x4c8   :  { %2388 = vmatpush3.bf16.msra.mxu1 %v2560_v2 }
 0x4c9   :  { %2389 = vmatprep.subr.bf16.mxu1 %v2561_v4 }
 0x4cc   :  { %2390 = vmatpush3.bf16.msra.mxu1 %v2561_v4 }
 0x4cd   :  { %2391 = vmatprep.subr.bf16.mxu1 %v2562_v23 }
 0x4d0   :  { %2392 = vmatpush3.bf16.msra.mxu1 %v2562_v23  ;;  %v2150_v23 = vld [vmem:[#allocation19] ss:$0 sm:$0xff] }
 0x4d1   :  { %2393 = vmatprep.subr.bf16.mxu1 %v2563_v24 }
 0x4d4   :  { %2394 = vmatpush3.bf16.msra.mxu1 %v2563_v24 }
 0x53c   :  { %v394_v35 = vpop.xlane.xlu0 %393 }
 0x53d   :  { %v400_v38 = vmax.f32 %v394_v35, 1.0 }
 0x53f   :  { %2596 = vrsqrt.f32 %v400_v38 }
 0x540   :  { %v388_v36 = vpop.xlane.xlu0 %387  ;;  %v397_v39 = vpop.xlane.xlu1 %396 }
 0x541   :  { %v398_v8 = vmax.f32 %v388_v36, 1.0  ;;  %v401_v6 = vmax.f32 %v397_v39, 1.0 }
 0x543   :  { %2598 = vrsqrt.f32 %v398_v8  ;;  %v1404_v8 = vld [vmem:[#allocation20] sm:$0xff] }
 0x544   :  { %v391_v40 = vpop.xlane.xlu0 %390  ;;  %2600 = vrsqrt.f32 %v401_v6  ;;  %v1405_v6 = vld [vmem:[#allocation20 + $0x8] sm:$0xff] }
 0x545   :  { %v399_v7 = vmax.f32 %v391_v40, 1.0  ;;  %v1588_v40 = vld [vmem:[%s3603_s14] sm:$0xff] }
 0x547   :  { %2602 = vrsqrt.f32 %v399_v7  ;;  %v1589_v7 = vld [vmem:[%s3603_s14 + $0x8] sm:$0xff] }
 0x54c   :  { %v3321_v43 = vpop.eup %2596 }
 0x550   :  { %v3324_v48 = vpop.eup %2598 }
 0x551   :  { %v3327_v53 = vpop.eup %2600 }
 0x554   :  { %v3330_v55 = vpop.eup %2602 }
 0x576   :  { %v2369_v26 = vpop.f32.mrf.mxu1 }
 0x577   :  { %v1047_v14 = vmul.f32 %v3304_v10, %v2369_v26 }
 0x578   :  { %v1013_v34 = vpop.f32.mrf.mxu1 }
 0x579   :  { %v1045_v18 = vmul.f32 %v3308_v13, %v1013_v34 }
 0x57a   :  { %v2370_v47 = vpop.f32.mrf.mxu1 }
 0x57b   :  { %v1048_v15 = vmul.f32 %v3306_v11, %v2370_v47 }
 0x57c   :  { %v1016_v17 = vpop.f32.mrf.mxu1 }
 0x57d   :  { %v1050_v19 = vpack.c.bf16 %v1048_v15, %v1047_v14  ;;  %v1046_v20 = vmul.f32 %v3312_v16, %v1016_v17  ;;  %v2571_v14 = vld [vmem:[#allocation17] sm:$0xff]  }
 0x57f   :  { %v1049_v21 = vpack.c.bf16 %v1046_v20, %v1045_v18  ;;  %2371 = vmatprep.subr.bf16.mxu0 %v1050_v19 }
 0x580   :  { %2372 = vmatpush3.bf16.msra.mxu0 %v1050_v19 }
 0x581   :  { %2373 = vmatprep.subr.bf16.mxu0 %v1049_v21 }
 0x584   :  { %2374 = vmatpush3.bf16.msra.mxu0 %v1049_v21  ;;  %v3000_v21 = vmov 0.0  }
 0x585   :  { %2427 = vmatprep.subr.mxu1 %v3000_v21 }
 0x587   :  { %2376 = vmatmul.mubr.msk.bf16.vlgmr.msra.gmra.mxu0 %vm329_vm2, %v3316_v22 }
 0x588   :  { %2403 = vmatprep.mubr.msk.bf16.mxu0 %vm329_vm2, %v412_v57 }
 0x647   :  { %v2377_v25 = vpop.f32.mrf.mxu0 }
 0x649   :  { %v1091_v27 = vpop.f32.mrf.mxu0 }
 0x64b   :  { %v2378_v29 = vpop.f32.mrf.mxu0 }
 0x64c   :  { %v1107_v33 = vpack.c.bf16 %v2378_v29, %v2377_v25 }
 0x64d   :  { %v1094_v30 = vpop.f32.mrf.mxu0 }
 0x64e   :  { %v1106_v31 = vpack.c.bf16 %v1094_v30, %v1091_v27 }
 0x650   :  { %2395 = vmatprep.mubr.bf16.mxu1 %v1106_v31 }
 0x651   :  { %2396 = vmatmul.mubr.bf16.vlgmr.msra.gmra.mxu1 %v1107_v33 }
 0x652   :  { %2435 = vmatprep.mubr.msk.f32.mxu1 %vm3001_vm5, %v3000_v21 }
 0x711   :  { %v2397_v41 = vpop.f32.mrf.mxu1 }
 0x712   :  { %v1205_v42 = vadd.f32 %v2397_v41, %v2139_v12  ;;  %v1590_v41 = vld [vmem:[%s3603_s14 + $0x10] sm:$0xff] }
 0x713   :  { %v1196_v37 = vpop.f32.mrf.mxu1 }
 0x714   :  { %v1213_v45 = vmul.f32 %v3321_v43, %v1205_v42  ;;  %v1197_v46 = vadd.f32 %v2139_v12, %v1196_v37  ;;  %v1496_v42 = vld [vmem:[#allocation22] sm:$0xff]  ;;  %v1497_v37 = vld [vmem:[#allocation22 + $0x8] sm:$0xff] }
 0x715   :  { %v2398_v49 = vpop.f32.mrf.mxu1 }
 0x716   :  { %v1217_v50 = vadd.f32 %v2369_v26, %v1213_v45  ;;  %v1211_v51 = vmul.f32 %v3324_v48, %v1197_v46  ;;  %v1208_v52 = vadd.f32 %v2398_v49, %v2139_v12  ;;  %v2565_v26 = vld [vmem:[#allocation17 + $0x30] sm:$0xff]   ;;  %v1681_v46 = vld [vmem:[#allocation23 + $0x8] sm:$0xff] }
 0x717   :  { %v1199_v56 = vpop.f32.mrf.mxu1  ;;  %v1498_v45 = vld [vmem:[#allocation22 + $0x10] sm:$0xff] }
 0x718   :  { %v1215_v54 = vadd.f32 %v1211_v51, %v1013_v34  ;;  %v1214_v57 = vmul.f32 %v3327_v53, %v1208_v52  ;;  %v1200_v44 = vadd.f32 %v2139_v12, %v1199_v56  ;;  %v1221_v58 = vmax.f32 %v1217_v50, 0.0  ;;  %v2566_v34 = vld [vmem:[#allocation17 + $0x28] sm:$0xff]   ;;  %v1406_v12 = vld [vmem:[#allocation20 + $0x10] sm:$0xff] }
 0x71a   :  { %v1218_v59 = vadd.f32 %v2370_v47, %v1214_v57  ;;  %v1212_v60 = vmul.f32 %v3330_v55, %v1200_v44  ;;  %v1219_v61 = vmax.f32 %v1215_v54, 0.0  ;;  %v1242_v1 = vmul.f32 %v3304_v10, %v1221_v58  ;;  %v2567_v10 = vld [vmem:[#allocation17 + $0x20] sm:$0xff]   ;;  %v2569_v47 = vld [vmem:[#allocation17 + $0x10] sm:$0xff]  }
 0x71c   :  { %v1222_v62 = vmax.f32 %v1218_v59, 0.0  ;;  %v1216_v63 = vadd.f32 %v1212_v60, %v1016_v17  ;;  %v1240_v5 = vmul.f32 %v3308_v13, %v1219_v61  ;;  %v2570_v13 = vld [vmem:[#allocation17 + $0x8] sm:$0xff]  }
 0x71e   :  { %v1220_v0 = vmax.f32 %v1216_v63, 0.0  ;;  %v1243_v2 = vmul.f32 %v3306_v11, %v1222_v62  ;;  %v2568_v11 = vld [vmem:[#allocation17 + $0x18] sm:$0xff]  }
 0x720   :  { %v1245_v4 = vpack.c.bf16 %v1243_v2, %v1242_v1  ;;  %v1241_v28 = vmul.f32 %v3312_v16, %v1220_v0 }
 0x722   :  { %2399 = vmatprep.subr.bf16.mxu0 %v1245_v4  ;;  %v1244_v32 = vpack.c.bf16 %v1241_v28, %v1240_v5 }
 0x723   :  { %2400 = vmatpush3.bf16.msra.mxu0 %v1245_v4 }
 0x724   :  { %2401 = vmatprep.subr.bf16.mxu0 %v1244_v32 }
 0x727   :  { %2402 = vmatpush3.bf16.msra.mxu0 %v1244_v32 }
 0x728   :  { %2407 = vmatprep.subr.bf16.mxu0 %v2564_v9 }
 0x72a   :  { %2404 = vmatmul.mubr.msk.bf16.vlgmr.msra.gmra.mxu0 %vm329_vm2, %v3316_v22 }
 0x72b   :  { %2408 = vmatpush3.bf16.msra.mxu0 %v2564_v9 }
 0x72c   :  { %2409 = vmatprep.subr.bf16.mxu0 %v2565_v26 }
 0x72f   :  { %2410 = vmatpush3.bf16.msra.mxu0 %v2565_v26 }
 0x730   :  { %2411 = vmatprep.subr.bf16.mxu0 %v2566_v34 }
 0x733   :  { %2412 = vmatpush3.bf16.msra.mxu0 %v2566_v34 }
 0x734   :  { %2413 = vmatprep.subr.bf16.mxu0 %v2567_v10 }
 0x737   :  { %2414 = vmatpush3.bf16.msra.mxu0 %v2567_v10 }
 0x738   :  { %2415 = vmatprep.subr.bf16.mxu0 %v2568_v11 }
 0x73b   :  { %2416 = vmatpush3.bf16.msra.mxu0 %v2568_v11 }
 0x73c   :  { %2417 = vmatprep.subr.bf16.mxu0 %v2569_v47 }
 0x73f   :  { %2418 = vmatpush3.bf16.msra.mxu0 %v2569_v47 }
 0x740   :  { %2419 = vmatprep.subr.bf16.mxu0 %v2570_v13 }
 0x743   :  { %2420 = vmatpush3.bf16.msra.mxu0 %v2570_v13 }
 0x744   :  { %2421 = vmatprep.subr.bf16.mxu0 %v2571_v14 }
 0x747   :  { %2422 = vmatpush3.bf16.msra.mxu0 %v2571_v14 }
 0x748   :  { %2461 = vmatprep.subr.mxu0 %v3000_v21 }
 0x7ea   :  { %v2405_v15 = vpop.f32.mrf.mxu0 }
 0x7ec   :  { %v1280_v16 = vpop.f32.mrf.mxu0 }
 0x7ee   :  { %v2406_v17 = vpop.f32.mrf.mxu0 }
 0x7ef   :  { %v1296_v20 = vpack.c.bf16 %v2406_v17, %v2405_v15 }
 0x7f0   :  { %v1283_v18 = vpop.f32.mrf.mxu0 }
 0x7f1   :  { %v1295_v19 = vpack.c.bf16 %v1283_v18, %v1280_v16 }
 0x7f3   :  { %2423 = vmatprep.mubr.bf16.mxu0 %v1295_v19 }
 0x7f4   :  { %2424 = vmatmul.mubr.bf16.vlgmr.msra.gmra.mxu0 %v1296_v20 }
 0x7f5   :  { %2469 = vmatprep.mubr.msk.f32.mxu0 %vm3001_vm5, %v3000_v21 }
 0x8b4   :  { %v2425_v22 = vpop.f32.mrf.mxu0 }
 0x8b5   :  { %v1394_v27 = vadd.f32 %v2425_v22, %v2150_v23 }
 0x8b6   :  { %v1385_v24 = vpop.f32.mrf.mxu0 }
 0x8b7   :  { %v1402_v35 = vmul.f32 %v3321_v43, %v1394_v27  ;;  %v1386_v36 = vadd.f32 %v2150_v23, %v1385_v24  ;;  %v1680_v43 = vld [vmem:[#allocation23] sm:$0xff] }
 0x8b8   :  { %v2426_v25 = vpop.f32.mrf.mxu0 }
 0x8b9   :  { %v1397_v29 = vadd.f32 %v2426_v25, %v2150_v23  ;;  %v1400_v39 = vmul.f32 %v3324_v48, %v1386_v36  ;;  %v1682_v48 = vld [vmem:[#allocation23 + $0x10] sm:$0xff] }
 0x8ba   :  { %v1388_v30 = vpop.f32.mrf.mxu0 }
 0x8bb   :  { %v1403_v31 = vmul.f32 %v3327_v53, %v1397_v29  ;;  %v1389_v33 = vadd.f32 %v2150_v23, %v1388_v30 }
 0x8bd   :  { %2428 = vmatpush3.msra.mxu1 %v1403_v31  ;;  %2462 = vmatpush3.msra.mxu0 %v1403_v31  ;;  %v1401_v38 = vmul.f32 %v3330_v55, %v1389_v33 }
 0x8be   :  { %2429 = vmatprep.subr.mxu1 %v3000_v21  ;;  %2463 = vmatprep.subr.mxu0 %v3000_v21 }
 0x8bf   :  { %2430 = vmatpush3.msra.mxu1 %v1402_v35  ;;  %2464 = vmatpush3.msra.mxu0 %v1402_v35 }
 0x8c0   :  { %2431 = vmatprep.subr.mxu1 %v3000_v21  ;;  %2465 = vmatprep.subr.mxu0 %v3000_v21 }
 0x8c1   :  { %2432 = vmatpush3.msra.mxu1 %v1401_v38  ;;  %2466 = vmatpush3.msra.mxu0 %v1401_v38 }
 0x8c2   :  { %2433 = vmatprep.subr.mxu1 %v3000_v21  ;;  %2467 = vmatprep.subr.mxu0 %v3000_v21 }
 0x8c3   :  { %2434 = vmatpush3.msra.mxu1 %v1400_v39  ;;  %2468 = vmatpush3.msra.mxu0 %v1400_v39 }
 0x8c4   :  { %2436 = vmatmul.mubr.msk.f32.vlgmr.msra.gmra.mxu1 %vm329_vm2, %v1404_v8  ;;  %2444 = vmatprep.subr.mxu1 %v3000_v21 }
 0x8c5   :  { %2470 = vmatmul.mubr.msk.f32.vlgmr.msra.gmra.mxu0 %vm329_vm2, %v1588_v40  ;;  %2478 = vmatprep.subr.mxu0 %v3000_v21 }
 0x8c6   :  { %2445 = vmatpush3.msra.mxu1 %v1403_v31  ;;  %2479 = vmatpush3.msra.mxu0 %v1403_v31 }
 0x8c7   :  { %2446 = vmatprep.subr.mxu1 %v3000_v21  ;;  %2480 = vmatprep.subr.mxu0 %v3000_v21 }
 0x8c8   :  { %2438 = vmatprep.mubr.msk.f32.mxu1 %vm3001_vm5, %v3000_v21  ;;  %2447 = vmatpush3.msra.mxu1 %v1402_v35 }
 0x8c9   :  { %2472 = vmatprep.mubr.msk.f32.mxu0 %vm3001_vm5, %v3000_v21  ;;  %2481 = vmatpush3.msra.mxu0 %v1402_v35 }
 0x8ca   :  { %2439 = vmatmul.mubr.msk.f32.gmra.mxu1 %vm329_vm2, %v1405_v6  ;;  %2448 = vmatprep.subr.mxu1 %v3000_v21 }
 0x8cb   :  { %2473 = vmatmul.mubr.msk.f32.gmra.mxu0 %vm329_vm2, %v1589_v7  ;;  %2482 = vmatprep.subr.mxu0 %v3000_v21 }
 0x8cc   :  { %2449 = vmatpush3.msra.mxu1 %v1401_v38  ;;  %2483 = vmatpush3.msra.mxu0 %v1401_v38 }
 0x8cd   :  { %2450 = vmatprep.subr.mxu1 %v3000_v21  ;;  %2484 = vmatprep.subr.mxu0 %v3000_v21 }
 0x8ce   :  { %2441 = vmatprep.mubr.msk.f32.mxu1 %vm3001_vm5, %v3000_v21  ;;  %2451 = vmatpush3.msra.mxu1 %v1400_v39 }
 0x8cf   :  { %2475 = vmatprep.mubr.msk.f32.mxu0 %vm3001_vm5, %v3000_v21  ;;  %2485 = vmatpush3.msra.mxu0 %v1400_v39 }
 0x8d0   :  { %2442 = vmatmul.mubr.msk.f32.gmra.mxu1 %vm329_vm2, %v1406_v12  ;;  %2476 = vmatmul.mubr.msk.f32.gmra.mxu0 %vm329_vm2, %v1590_v41 }
 0x8d1   :  { %2452 = vmatprep.mubr.msk.f32.mxu1 %vm3001_vm5, %v3000_v21  ;;  %2495 = vmatprep.subr.mxu1 %v3000_v21 }
 0x8d2   :  { %2486 = vmatprep.mubr.msk.f32.mxu0 %vm3001_vm5, %v3000_v21 }
 0x8d4   :  { %2453 = vmatmul.mubr.msk.f32.vlgmr.msra.gmra.mxu1 %vm329_vm2, %v1496_v42  ;;  %2487 = vmatmul.mubr.msk.f32.vlgmr.msra.gmra.mxu0 %vm329_vm2, %v1680_v43 }
 0x8d5   :  { %2499 = vmatpush3.msra.mxu1 %v1403_v31  ;;  %2455 = vmatprep.mubr.msk.f32.mxu1 %vm3001_vm5, %v3000_v21 }
 0x8d6   :  { %2496 = vmatprep.subr.mxu1 %v3000_v21 }
 0x8d7   :  { %2500 = vmatpush3.msra.mxu1 %v1402_v35 }
 0x8d8   :  { %2497 = vmatprep.subr.mxu1 %v3000_v21  ;;  %2456 = vmatmul.mubr.msk.f32.gmra.mxu1 %vm329_vm2, %v1497_v37 }
 0x8d9   :  { %2501 = vmatpush3.msra.mxu1 %v1401_v38  ;;  %2458 = vmatprep.mubr.msk.f32.mxu1 %vm3001_vm5, %v3000_v21 }
 0x8da   :  { %2498 = vmatprep.subr.mxu1 %v3000_v21 }
 0x8db   :  { %2502 = vmatpush3.msra.mxu1 %v1400_v39 }
 0x8dc   :  { %2459 = vmatmul.mubr.msk.f32.gmra.mxu1 %vm329_vm2, %v1498_v45 }
 0x8dd   :  { %2489 = vmatprep.mubr.msk.f32.mxu1 %vm3001_vm5, %v3000_v21 }
 0x8e0   :  { %2490 = vmatmul.mubr.msk.f32.vlgmr.msra.gmra.mxu1 %vm329_vm2, %v1681_v46 }
 0x8e1   :  { %2492 = vmatprep.mubr.msk.f32.mxu1 %vm3001_vm5, %v3000_v21 }
 0x8e4   :  { %2493 = vmatmul.mubr.msk.f32.gmra.mxu1 %vm329_vm2, %v1682_v48 }
 0x984   :  { %v1482_v49 = vpop.f32.mrf.mxu1 }
 0x985   :  { %v1666_v50 = vpop.f32.mrf.mxu0  ;;  %v1781_v51 = vmul.f32 %v1482_v49, %v1482_v49 }
 0x986   :  { %v2437_v52 = vpop.f32.mrf.mxu1  ;;  %v1865_v56 = vmul.f32 %v1666_v50, %v1666_v50 }
 0x987   :  { %v2471_v53 = vpop.f32.mrf.mxu0  ;;  %1784 = vadd.xlane.f32.xlu0 %v1781_v51 }
 0x98a   :  { %v1487_v54 = vpop.f32.mrf.mxu1 }
 0x98b   :  { %v1671_v57 = vpop.f32.mrf.mxu0  ;;  %1868 = vadd.xlane.f32.xlu0 %v1865_v56  ;;  %v1782_v44 = vmul.f32 %v1487_v54, %v1487_v54 }
 0x98c   :  { %v2440_v55 = vpop.f32.mrf.mxu1  ;;  %v1866_v59 = vmul.f32 %v1671_v57, %v1671_v57 }
 0x98d   :  { %v2474_v58 = vpop.f32.mrf.mxu0 }
 0x98f   :  { %1786 = vadd.xlane.f32.xlu0 %v1782_v44 }
 0x990   :  { %v1492_v60 = vpop.f32.mrf.mxu1  ;;  %v1676_v61 = vpop.f32.mrf.mxu0 }
 0x991   :  { %v1783_v2 = vmul.f32 %v1492_v60, %v1492_v60  ;;  %v1867_v18 = vmul.f32 %v1676_v61, %v1676_v61 }
 0x992   :  { %v2443_v62 = vpop.f32.mrf.mxu1  ;;  %v2477_v63 = vpop.f32.mrf.mxu0 }
 0x993   :  { %1870 = vadd.xlane.f32.xlu0 %v1866_v59 }
 0x994   :  { %v1574_v0 = vpop.f32.mrf.mxu1  ;;  %v1758_v1 = vpop.f32.mrf.mxu0 }
 0x995   :  { %v1811_v32 = vmul.f32 %v1574_v0, %v1574_v0  ;;  %v1895_v26 = vmul.f32 %v1758_v1, %v1758_v1  ;;  %v1772_v21 = vmul.f32 %v1574_v0, %v1482_v49  ;;  %v1856_v23 = vmul.f32 %v1758_v1, %v1666_v50 }
 0x996   :  { %v2454_v4 = vpop.f32.mrf.mxu1  ;;  %v2488_v5 = vpop.f32.mrf.mxu0 }
 0x997   :  { %1788 = vadd.xlane.f32.xlu0 %v1783_v2 }
 0x998   :  { %v1579_v28 = vpop.f32.mrf.mxu1 }
 0x999   :  { %v1812_v14 = vmul.f32 %v1579_v28, %v1579_v28  ;;  %v1773_v20 = vmul.f32 %v1579_v28, %v1487_v54 }
 0x99a   :  { %v2457_v9 = vpop.f32.mrf.mxu1 }
 0x99b   :  { %1814 = vadd.xlane.f32.xlu0 %v1811_v32 }
 0x99c   :  { %v1584_v34 = vpop.f32.mrf.mxu1 }
 0x99d   :  { %v1813_v10 = vmul.f32 %v1584_v34, %v1584_v34  ;;  %v1774_v25 = vmul.f32 %v1584_v34, %v1492_v60 }
 0x99e   :  { %v2460_v11 = vpop.f32.mrf.mxu1 }
 0x99f   :  { %1818 = vadd.xlane.f32.xlu1 %v1813_v10  ;;  %1898 = vadd.xlane.f32.xlu0 %v1895_v26 }
 0x9a0   :  { %v1763_v47 = vpop.f32.mrf.mxu1 }
 0x9a1   :  { %v1896_v13 = vmul.f32 %v1763_v47, %v1763_v47  ;;  %v1857_v22 = vmul.f32 %v1763_v47, %v1671_v57 }
 0x9a2   :  { %v2491_v15 = vpop.f32.mrf.mxu1 }
 0x9a3   :  { %1900 = vadd.xlane.f32.xlu1 %v1896_v13  ;;  %1816 = vadd.xlane.f32.xlu0 %v1812_v14 }
 0x9a4   :  { %v1768_v16 = vpop.f32.mrf.mxu1 }
 0x9a5   :  { %v1897_v17 = vmul.f32 %v1768_v16, %v1768_v16  ;;  %v1858_v24 = vmul.f32 %v1768_v16, %v1676_v61 }
 0x9a6   :  { %v2494_v19 = vpop.f32.mrf.mxu1 }
 0x9a7   :  { %1902 = vadd.xlane.f32.xlu1 %v1897_v17  ;;  %1872 = vadd.xlane.f32.xlu0 %v1867_v18 }
 0x9ab   :  { %1777 = vadd.xlane.f32.xlu1 %v1773_v20  ;;  %1775 = vadd.xlane.f32.xlu0 %v1772_v21 }
 0x9af   :  { %1861 = vadd.xlane.f32.xlu1 %v1857_v22  ;;  %1859 = vadd.xlane.f32.xlu0 %v1856_v23 }
 0x9b3   :  { %1863 = vadd.xlane.f32.xlu1 %v1858_v24  ;;  %1779 = vadd.xlane.f32.xlu0 %v1774_v25 }
 0xa10   :  { %v1785_v27 = vpop.xlane.xlu0 %1784 }
 0xa11   :  { %2604 = vrsqrt.f32 %v1785_v27  ;;  %vm1792_vm6 = vcmp.eq.f32.partialorder %v1785_v27, inf  ;;  %vm1794_vm7 = vcmp.eq.f32.partialorder %v1785_v27, 0.0  ;;  %v1795_v37 = vand.u32 2147483648, %v1785_v27 }
 0xa14   :  { %v1869_v29 = vpop.xlane.xlu0 %1868 }
 0xa15   :  { %2606 = vrsqrt.f32 %v1869_v29  ;;  %vm1876_vm8 = vcmp.eq.f32.partialorder %v1869_v29, inf  ;;  %vm1878_vm9 = vcmp.eq.f32.partialorder %v1869_v29, 0.0  ;;  %v1879_v48 = vand.u32 2147483648, %v1869_v29 }
 0xa18   :  { %v1787_v30 = vpop.xlane.xlu0 %1786 }
 0xa19   :  { %2608 = vrsqrt.f32 %v1787_v30  ;;  %vm1799_vm10 = vcmp.eq.f32.partialorder %v1787_v30, inf  ;;  %vm1801_vm11 = vcmp.eq.f32.partialorder %v1787_v30, 0.0  ;;  %v1802_v50 = vand.u32 2147483648, %v1787_v30 }
 0xa1c   :  { %v3408_v31 = vpop.xlane.xlu0 %1870 }
 0xa1d   :  { %vm1883_vm12 = vcmp.eq.f32.partialorder %v3408_v31, inf  ;;  %vm1885_vm13 = vcmp.eq.f32.partialorder %v3408_v31, 0.0  ;;  %v1886_v44 = vand.u32 2147483648, %v3408_v31 }
 0xa1e   :  { %v2605_v36 = vpop.eup %2604 }
 0xa1f   :  { %v1791_v6 = vmul.f32 %v2605_v36, %v1785_v27 }
 0xa20   :  { %v3410_v33 = vpop.xlane.xlu0 %1788 }
 0xa21   :  { %2610 = vrsqrt.f32 %v3410_v33  ;;  %v1793_v43 = vsel %vm1792_vm6, %v1785_v27, %v1791_v6  ;;  %vm1806_vm14 = vcmp.eq.f32.partialorder %v3410_v33, inf  ;;  %vm1808_vm15 = vcmp.eq.f32.partialorder %v3410_v33, 0.0 }
 0xa22   :  { %2612 = vrsqrt.f32 %v3408_v31  ;;  %v2607_v38 = vpop.eup %2606  ;;  %v1796_v51 = vsel %vm1794_vm7, %v1795_v37, %v1793_v43  ;;  %v1809_v59 = vand.u32 2147483648, %v3410_v33 }
 0xa23   :  { %v1875_v7 = vmul.f32 %v2607_v38, %v1869_v29  ;;  %v1841_v60 = vmax.f32 %v1796_v51, 1e-06 }
 0xa24   :  { %v1815_v35 = vpop.xlane.xlu0 %1814 }
 0xa25   :  { %2614 = vrsqrt.f32 %v1815_v35  ;;  %v1877_v46 = vsel %vm1876_vm8, %v1869_v29, %v1875_v7  ;;  %vm1822_vm0 = vcmp.eq.f32.partialorder %v1815_v35, inf  ;;  %vm1824_vm1 = vcmp.eq.f32.partialorder %v1815_v35, 0.0 }
 0xa26   :  { %v2609_v40 = vpop.eup %2608  ;;  %v1880_v57 = vsel %vm1878_vm9, %v1879_v48, %v1877_v46  ;;  %v1825_v1 = vand.u32 2147483648, %v1815_v35 }
 0xa27   :  { %v1798_v12 = vmul.f32 %v2609_v40, %v1787_v30  ;;  %v1925_v63 = vmax.f32 %v1880_v57, 1e-06 }
 0xa28   :  { %v3414_v39 = vpop.xlane.xlu1 %1818  ;;  %v3416_v8 = vpop.xlane.xlu0 %1898 }
 0xa29   :  { %2616 = vrsqrt.f32 %v3414_v39  ;;  %v1800_v52 = vsel %vm1799_vm10, %v1787_v30, %v1798_v12  ;;  %vm1836_vm2 = vcmp.eq.f32.partialorder %v3414_v39, inf  ;;  %vm1838_vm3 = vcmp.eq.f32.partialorder %v3414_v39, 0.0 }
 0xa2a   :  { %2618 = vrsqrt.f32 %v3416_v8  ;;  %v3442_v61 = vsel %vm1801_vm11, %v1802_v50, %v1800_v52  ;;  %v1839_v4 = vand.u32 2147483648, %v3414_v39  ;;  %vm1906_vm4 = vcmp.eq.f32.partialorder %v3416_v8, inf }
 0xa2b   :  { %v1842_v28 = vmax.f32 %v3442_v61, 1e-06  ;;  %vm1908_vm5 = vcmp.eq.f32.partialorder %v3416_v8, 0.0  ;;  %v1909_v13 = vand.u32 2147483648, %v3416_v8 }
 0xa2c   :  { %v3420_v41 = vpop.xlane.xlu1 %1900  ;;  %v3422_v42 = vpop.xlane.xlu0 %1816 }
 0xa2d   :  { %2620 = vrsqrt.f32 %v3420_v41  ;;  %vm1913_vm6 = vcmp.eq.f32.partialorder %v3420_v41, inf  ;;  %vm1915_vm7 = vcmp.eq.f32.partialorder %v3420_v41, 0.0  ;;  %v1916_v16 = vand.u32 2147483648, %v3420_v41 }
 0xa2e   :  { %v2611_v45 = vpop.eup %2610  ;;  %2622 = vrsqrt.f32 %v3422_v42  ;;  %vm1829_vm8 = vcmp.eq.f32.partialorder %v3422_v42, inf  ;;  %vm1831_vm9 = vcmp.eq.f32.partialorder %v3422_v42, 0.0 }
 0xa2f   :  { %v2613_v49 = vpop.eup %2612  ;;  %v1805_v53 = vmul.f32 %v2611_v45, %v3410_v33 }
 0xa30   :  { %v3430_v56 = vpop.xlane.xlu1 %1902  ;;  %v3432_v54 = vpop.xlane.xlu0 %1872  ;;  %v1882_v58 = vmul.f32 %v2613_v49, %v3408_v31 }
 0xa31   :  { %2624 = vrsqrt.f32 %v3430_v56  ;;  %v1807_v0 = vsel %vm1806_vm14, %v3410_v33, %v1805_v53  ;;  %v1832_v33 = vand.u32 2147483648, %v3422_v42  ;;  %vm1920_vm10 = vcmp.eq.f32.partialorder %v3430_v56, inf }
 0xa32   :  { %v2615_v55 = vpop.eup %2614  ;;  %2626 = vrsqrt.f32 %v3432_v54  ;;  %v1884_v32 = vsel %vm1883_vm12, %v3408_v31, %v1882_v58  ;;  %v1810_v34 = vsel %vm1808_vm15, %v1809_v59, %v1807_v0  ;;  %vm1922_vm11 = vcmp.eq.f32.partialorder %v3430_v56, 0.0 }
 0xa33   :  { %v1821_v62 = vmul.f32 %v2615_v55, %v1815_v35  ;;  %v1887_v14 = vsel %vm1885_vm13, %v1886_v44, %v1884_v32  ;;  %v1843_v19 = vmax.f32 %v1810_v34, 1e-06  ;;  %v1923_v37 = vand.u32 2147483648, %v3430_v56 }
 0xa34   :  { %v1926_v27 = vmax.f32 %v1887_v14, 1e-06  ;;  %vm1890_vm12 = vcmp.eq.f32.partialorder %v3432_v54, inf  ;;  %v1893_v46 = vand.u32 2147483648, %v3432_v54  ;;  %vm1892_vm13 = vcmp.eq.f32.partialorder %v3432_v54, 0.0  ;;  %v1778_v59 = vpop.xlane.xlu1 %1777 }
 0xa35   :  { %v1823_v2 = vsel %vm1822_vm0, %v1815_v35, %v1821_v62  ;;  %vm1940_vm14 = vcmask 7168  }
 0xa36   :  { %v2617_v5 = vpop.eup %2616  ;;  %v1826_v9 = vsel %vm1824_vm1, %v1825_v1, %v1823_v2 }
 0xa37   :  { %v2619_v26 = vpop.eup %2618  ;;  %v1844_v10 = vmax.f32 %v1826_v9, 1e-06  ;;  %v1835_v11 = vmul.f32 %v2617_v5, %v3414_v39 }
 0xa38   :  { %v1905_v47 = vmul.f32 %v2619_v26, %v3416_v8 }
 0xa39   :  { %v1837_v15 = vsel %vm1836_vm2, %v3414_v39, %v1835_v11  ;;  %v1847_v17 = vmul.f32 %v1844_v10, %v1841_v60 }
 0xa3a   :  { %v2621_v18 = vpop.eup %2620  ;;  %v1840_v20 = vsel %vm1838_vm3, %v1839_v4, %v1837_v15  ;;  %v1907_v21 = vsel %vm1906_vm4, %v3416_v8, %v1905_v47  ;;  %v1862_v4 = vpop.xlane.xlu1 %1861  ;;  %vm1949_vm4 = vcmp.lt.s32.totalorder %v3173_v3, 20 }
 0xa3b   :  { %v2623_v22 = vpop.eup %2622  ;;  %v1846_v23 = vmax.f32 %v1840_v20, 1e-06  ;;  %v1910_v24 = vsel %vm1908_vm5, %v1909_v13, %v1907_v21  ;;  %v1912_v25 = vmul.f32 %v2621_v18, %v3420_v41  ;;  %2628 = vrcp.f32 %v1847_v17 }
 0xa3c   :  { %v1928_v29 = vmax.f32 %v1910_v24, 1e-06  ;;  %v1828_v30 = vmul.f32 %v2623_v22, %v3422_v42 }
 0xa3d   :  { %v1914_v31 = vsel %vm1913_vm6, %v3420_v41, %v1912_v25  ;;  %v1849_v35 = vmul.f32 %v1846_v23, %v1843_v19  ;;  %v1776_v41 = vpop.xlane.xlu0 %1775  ;;  %vm2067_vm6 = vcmask 0  }
 0xa3e   :  { %v2625_v36 = vpop.eup %2624  ;;  %v1917_v38 = vsel %vm1915_vm7, %v1916_v16, %v1914_v31  ;;  %v1830_v39 = vsel %vm1829_vm8, %v3422_v42, %v1828_v30  ;;  %v1931_v8 = vmul.f32 %v1928_v29, %v1925_v63  ;;  %v1864_v18 = vpop.xlane.xlu1 %1863 }
 0xa3f   :  { %v2627_v40 = vpop.eup %2626  ;;  %v1929_v6 = vmax.f32 %v1917_v38, 1e-06  ;;  %v1833_v7 = vsel %vm1831_vm9, %v1832_v33, %v1830_v39  ;;  %v1919_v12 = vmul.f32 %v2625_v36, %v3430_v56  ;;  %2630 = vrcp.f32 %v1849_v35 }
 0xa40   :  { %v1845_v43 = vmax.f32 %v1833_v7, 1e-06  ;;  %v1889_v45 = vmul.f32 %v2627_v40, %v3432_v54  ;;  %2632 = vrcp.f32 %v1931_v8 }
 0xa41   :  { %v1921_v42 = vsel %vm1920_vm10, %v3430_v56, %v1919_v12  ;;  %v1932_v48 = vmul.f32 %v1929_v6, %v1926_v27  ;;  %v1860_v44 = vpop.xlane.xlu0 %1859 }
 0xa42   :  { %v1924_v49 = vsel %vm1922_vm11, %v1923_v37, %v1921_v42  ;;  %v1891_v50 = vsel %vm1890_vm12, %v3432_v54, %v1889_v45  ;;  %v1848_v51 = vmul.f32 %v1845_v43, %v1842_v28 }
 0xa43   :  { %v1894_v52 = vsel %vm1892_vm13, %v1893_v46, %v1891_v50  ;;  %2634 = vrcp.f32 %v1932_v48  ;;  %v1930_v53 = vmax.f32 %v1924_v49, 1e-06 }
 0xa44   :  { %v1927_v57 = vmax.f32 %v1894_v52, 1e-06  ;;  %2636 = vrcp.f32 %v1848_v51 }
 0xa45   :  { %v1780_v61 = vpop.xlane.xlu0 %1779 }
 0xa46   :  { %v1933_v55 = vmul.f32 %v1930_v53, %v1927_v57 }
 0xa48   :  { %v2629_v58 = vpop.eup %2628  ;;  %2638 = vrcp.f32 %v1933_v55 }
 0xa49   :  { %v3501_v60 = vmul.f32 %v2629_v58, %v1776_v41 }
 0xa4b   :  { %1941 = vst.msk [vmem:[%s3605_s16] sm:$0xff] %vm1940_vm14, %v3501_v60  ;;  %v1956_v56 = vand.u32 2147483647, %v3501_v60  ;;  %v1950_v7 = vsub.f32 0.0, %v3501_v60 }
 0xa4c   :  { %v2631_v54 = vpop.eup %2630 }
 0xa4d   :  { %v2633_v62 = vpop.eup %2632  ;;  %v1959_v63 = vsub.f32 0.0, %v1956_v56  ;;  %v3509_v0 = vmul.f32 %v2631_v54, %v1780_v61  ;;  %v1953_v49 = vmax.f32 %v1950_v7, 0.0 }
 0xa4e   :  { %v3511_v1 = vmul.f32 %v2633_v62, %v1860_v44 }
 0xa4f   :  { %v1962_v2 = vmul.f32 1.442695, %v1959_v63  ;;  %1943 = vst.msk [vmem:[%s3605_s16 + $0x10] sm:$0xff] %vm1940_vm14, %v3509_v0  ;;  %v1958_v5 = vand.u32 2147483647, %v3509_v0  ;;  %v1952_v41 = vsub.f32 0.0, %v3509_v0 }
 0xa50   :  { %v2635_v28 = vpop.eup %2634  ;;  %1944 = vst.msk [vmem:[%s3606_s17] sm:$0xff] %vm1940_vm14, %v3511_v1  ;;  %v2004_v32 = vand.u32 2147483647, %v3511_v1 }
 0xa51   :  { %v2637_v9 = vpop.eup %2636  ;;  %2640 = vpow2.f32 %v1962_v2  ;;  %v3525_v26 = vmul.f32 %v2635_v28, %v1862_v4  ;;  %v1961_v34 = vsub.f32 0.0, %v1958_v5  ;;  %v1955_v56 = vmax.f32 %v1952_v41, 0.0 }
 0xa52   :  { %v3527_v10 = vmul.f32 %v2637_v9, %v1778_v59  ;;  %v2007_v11 = vsub.f32 0.0, %v2004_v32 }
 0xa53   :  { %1945 = vst.msk [vmem:[%s3606_s17 + $0x8] sm:$0xff] %vm1940_vm14, %v3525_v26  ;;  %v2005_v47 = vand.u32 2147483647, %v3525_v26  ;;  %v1966_v13 = vmul.f32 1.442695, %v1961_v34 }
 0xa54   :  { %1942 = vst.msk [vmem:[%s3605_s16 + $0x8] sm:$0xff] %vm1940_vm14, %v3527_v10  ;;  %v1957_v14 = vand.u32 2147483647, %v3527_v10  ;;  %v2010_v15 = vmul.f32 1.442695, %v2007_v11  ;;  %v1951_v42 = vsub.f32 0.0, %v3527_v10 }
 0xa55   :  { %v2639_v16 = vpop.eup %2638  ;;  %v2008_v17 = vsub.f32 0.0, %v2005_v47  ;;  %2642 = vpow2.f32 %v1966_v13  ;;  %s3002_s16 = smov [#allocation25]  }
 0xa56   :  { %v1960_v19 = vsub.f32 0.0, %v1957_v14  ;;  %2644 = vpow2.f32 %v2010_v15  ;;  %v3541_v20 = vmul.f32 %v2639_v16, %v1864_v18  ;;  %v1954_v61 = vmax.f32 %v1951_v42, 0.0 }
 0xa57   :  { %v2012_v21 = vmul.f32 1.442695, %v2008_v17 }
 0xa58   :  { %v1964_v22 = vmul.f32 1.442695, %v1960_v19  ;;  %1946 = vst.msk [vmem:[%s3606_s17 + $0x10] sm:$0xff] %vm1940_vm14, %v3541_v20  ;;  %v2006_v23 = vand.u32 2147483647, %v3541_v20  ;;  %v2003_v7 = vmax.f32 %v3541_v20, 0.0 }
 0xa59   :  { %2646 = vpow2.f32 %v2012_v21  ;;  %s2079_s17 = sshll.u32 %s3002_s16, 4  ;;  %s2080_s17 = int_to_ptr.vmem [resolvable:$true] %s2079_s17 }
 0xa5a   :  { %2648 = vpow2.f32 %v1964_v22  ;;  %v2009_v24 = vsub.f32 0.0, %v2006_v23  ;;  %s2944_s2 = scalar_lea.vmem %s2080_s17, 16  ;;  %s2948_s9 = scalar_lea.vmem %s2080_s17, 32 }
 0xa5b   :  { %p2945_p0 = scmp.ne.s32.totalorder %s2080_s17, %s2944_s2  ;;  %p2949_p1 = scmp.lt.s32.totalorder %s2080_s17, %s2080_s17 }
 0xa5c   :  { %v2014_v25 = vmul.f32 1.442695, %v2009_v24  ;;  %p2950_p2 = scmp.lt.s32.totalorder %s2948_s9, %s2944_s2 }
 0xa5e   :  { %v2641_v27 = vpop.eup %2640  ;;  %2650 = vpow2.f32 %v2014_v25  ;;  %p2951_p3 = por %p2950_p2, %p2949_p1 }
 0xa5f   :  { %v1968_v29 = vadd.f32 1.0, %v2641_v27  ;;  %v1971_v43 = vmul.f32 -0.5, %v2641_v27  ;;  %v1974_v50 = vand.u32 2147483647, %v2641_v27 }
 0xa60   :  { %p2952_p4 = pnand %p2951_p3, %p2945_p0 }
 0xa61   :  { %2652 = vlog2.f32 %v1968_v29  ;;  %v1972_v53 = vadd.f32 1.0, %v1971_v43  ;;  %vm3556_vm15 = vcmp.lt.f32.partialorder %v1974_v50, 0.0004427343  ;;  %v2001_v29 = vmax.f32 %v3511_v1, 0.0 }
 0xa62   :  { %v2643_v30 = vpop.eup %2642 }
 0xa63   :  { %v2645_v31 = vpop.eup %2644  ;;  %v1986_v33 = vadd.f32 1.0, %v2643_v30  ;;  %v1989_v12 = vmul.f32 -0.5, %v2643_v30  ;;  %v1992_v55 = vand.u32 2147483647, %v2643_v30  ;;  %v1973_v9 = vmul.f32 %v2641_v27, %v1972_v53 }
 0xa64   :  { %v2016_v35 = vadd.f32 1.0, %v2645_v31  ;;  %v2019_v37 = vmul.f32 -0.5, %v2645_v31  ;;  %v2022_v44 = vand.u32 2147483647, %v2645_v31  ;;  %v2002_v27 = vmax.f32 %v3525_v26, 0.0 }
 0xa65   :  { %2654 = vlog2.f32 %v1986_v33  ;;  %v1990_v51 = vadd.f32 1.0, %v1989_v12  ;;  %vm3564_vm1 = vcmp.lt.f32.partialorder %v1992_v55, 0.0004427343 }
 0xa66   :  { %v2647_v36 = vpop.eup %2646  ;;  %2656 = vlog2.f32 %v2016_v35  ;;  %v2020_v57 = vadd.f32 1.0, %v2019_v37  ;;  %vm3560_vm0 = vcmp.lt.f32.partialorder %v2022_v44, 0.0004427343 }
 0xa67   :  { %v2649_v38 = vpop.eup %2648  ;;  %v2025_v39 = vadd.f32 1.0, %v2647_v36  ;;  %v2028_v45 = vmul.f32 -0.5, %v2647_v36  ;;  %v2031_v60 = vand.u32 2147483647, %v2647_v36  ;;  %v1991_v28 = vmul.f32 %v2643_v30, %v1990_v51 }
 0xa68   :  { %v1977_v8 = vadd.f32 1.0, %v2649_v38  ;;  %v1980_v46 = vmul.f32 -0.5, %v2649_v38  ;;  %v1983_v2 = vand.u32 2147483647, %v2649_v38  ;;  %v2021_v34 = vmul.f32 %v2645_v31, %v2020_v57 }
 0xa69   :  { %2658 = vlog2.f32 %v2025_v39  ;;  %v2029_v59 = vadd.f32 1.0, %v2028_v45  ;;  %vm3568_vm2 = vcmp.lt.f32.partialorder %v2031_v60, 0.0004427343 }
 0xa6a   :  { %2660 = vlog2.f32 %v1977_v8  ;;  %v1981_v62 = vadd.f32 1.0, %v1980_v46  ;;  %vm1984_vm3 = vcmp.lt.f32.partialorder %v1983_v2, 0.0004427343 }
 0xa6b   :  { %v3549_v40 = vpop.eup %2650  ;;  %v2030_v14 = vmul.f32 %v2647_v36, %v2029_v59 }
 0xa6c   :  { %v2034_v6 = vadd.f32 1.0, %v3549_v40  ;;  %v2037_v0 = vmul.f32 -0.5, %v3549_v40  ;;  %v1982_v18 = vmul.f32 %v2649_v38, %v1981_v62  ;;  %v2040_v24 = vand.u32 2147483647, %v3549_v40 }
 0xa6e   :  { %2662 = vlog2.f32 %v2034_v6  ;;  %v2653_v48 = vpop.eup %2652  ;;  %v2038_v21 = vadd.f32 1.0, %v2037_v0  ;;  %vm2041_vm5 = vcmp.lt.f32.partialorder %v2040_v24, 0.0004427343 }
 0xa6f   :  { %v1970_v63 = vmul.f32 0.6931472, %v2653_v48 }
 0xa70   :  { %v2039_v8 = vmul.f32 %v3549_v40, %v2038_v21 }
 0xa71   :  { %v1976_v19 = vsel %vm3556_vm15, %v1973_v9, %v1970_v63 }
 0xa72   :  { %v2655_v52 = vpop.eup %2654  ;;  %v1995_v35 = vadd.f32 %v1976_v19, %v1953_v49 }
 0xa73   :  { %v2657_v58 = vpop.eup %2656  ;;  %v1988_v54 = vmul.f32 0.6931472, %v2655_v52 }
 0xa74   :  { %v2018_v5 = vmul.f32 0.6931472, %v2657_v58 }
 0xa75   :  { %v1994_v16 = vsel %vm3564_vm1, %v1991_v28, %v1988_v54 }
 0xa76   :  { %v2659_v32 = vpop.eup %2658  ;;  %v2024_v23 = vsel %vm3560_vm0, %v2021_v34, %v2018_v5  ;;  %v1997_v30 = vadd.f32 %v1994_v16, %v1955_v56 }
 0xa77   :  { %v2661_v47 = vpop.eup %2660  ;;  %v2027_v13 = vmul.f32 0.6931472, %v2659_v32  ;;  %v2043_v38 = vadd.f32 %v2024_v23, %v2001_v29 }
 0xa78   :  { %v1979_v17 = vmul.f32 0.6931472, %v2661_v47  ;;  %v2000_v43 = vsel %vm1949_vm4, %v1997_v30, 0.0 }
 0xa79   :  { %v2033_v22 = vsel %vm3568_vm2, %v2030_v14, %v2027_v13 }
 0xa7a   :  { %v1985_v25 = vsel %vm1984_vm3, %v1982_v18, %v1979_v17  ;;  %v2044_v36 = vadd.f32 %v2033_v22, %v2002_v27 }
 0xa7b   :  { %v2663_v31 = vpop.eup %2662  ;;  %v1996_v33 = vadd.f32 %v1985_v25, %v1954_v61 }
 0xa7c   :  { %v2036_v39 = vmul.f32 0.6931472, %v2663_v31  ;;  %v2057_v1 = vadd.f32 %v2044_v36, %v2043_v38 }
 0xa7d   :  { %v2049_v6 = vadd.f32 %v1996_v33, %v1995_v35 }
 0xa7e   :  { %v2042_v12 = vsel %vm2041_vm5, %v2039_v8, %v2036_v39 }
 0xa7f   :  { %v2045_v26 = vadd.f32 %v2042_v12, %v2003_v7  ;;  %v2050_v37 = vadd.f32 %v2049_v6, %v2000_v43 }
 0xa81   :  { %v2048_v45 = vsel %vm1949_vm4, %v2045_v26, 0.0  ;;  %v2051_v41 = vrot.slane %v2050_v37, 4 }
 0xa82   :  { %v2058_v42 = vadd.f32 %v2057_v1, %v2048_v45 }
 0xa83   :  { %v2052_v3 = vadd.f32 %v2051_v41, %v2050_v37 }
 0xa84   :  { %v2059_v46 = vrot.slane %v2058_v42, 4 }
 0xa85   :  { %v2053_v48 = vrot.slane %v2052_v3, 2 }
 0xa86   :  { %v2060_v49 = vadd.f32 %v2059_v46, %v2058_v42 }
 0xa87   :  { %v2054_v50 = vadd.f32 %v2053_v48, %v2052_v3 }
 0xa88   :  { %v2061_v51 = vrot.slane %v2060_v49, 2 }
 0xa89   :  { %v2055_v52 = vrot.slane %v2054_v50, 1 }
 0xa8a   :  { %v2062_v40 = vadd.f32 %v2061_v51, %v2060_v49 }
 0xa8b   :  { %v2056_v57 = vadd.f32 %v2055_v52, %v2054_v50 }
 0xa8c   :  { %v2063_v53 = vrot.slane %v2062_v40, 1 }
 0xa8e   :  { %v2064_v20 = vadd.f32 %v2063_v53, %v2062_v40 }
 0xa90   :  { %v2065_v44 = vadd.f32 %v2064_v20, %v2056_v57 }
 0xa92   :  { %v2066_v55 = vmul.f32 0.025, %v2065_v44 }
 0xa94   :  { %2068 = vst.msk [vmem:[#allocation25] sm:$0x1] %vm2067_vm6, %v2066_v55 }
 0xa95   :  { %2955 = shalt.err (!%p2952_p4)
}
 0xa96   :  { %2082 = dma.vmem_to_hbm [thread:$0]  %s2080_s17, 16, %s3607_s18, [#allocation4]  }
 0xa97   :  { %2980 = dma.done.wait [#allocation4], 16  }
 0xa98   :  { %2981 = vsyncadd [#allocation4], 4294967280 }
 0xa99   :  { %2090 = vsyncpa [#allocation3], 1 }
 0xa9a   :  { %2091 = vsyncpa [#allocation6], 1 }
 0xa9b   :  { %2092 = vsyncpa [#allocation9], 1 }
 0xa9c   :  { %2093 = vsyncpa [#allocation12], 1 }
 0xa9d   :  { %2094 = vsyncpa [#allocation15], 1 }
 0xa9e   :  { %2095 = vsyncpa [#allocation18], 1 }
 0xa9f   :  { %2096 = vsyncpa [#allocation21], 1 }
 0xaa0   :  { %2097 = vsyncpa [#allocation24], 1 }
 0xaa1   :  { %2098 = vsyncpa [#allocation4], 1 }

</bundles_post_ra>
